<compile_context>
chip_gen: v7x
topology: tpu7x:2x2x1
jax: 0.10.0
libtpu: 0.0.40
codegen_flags: <defaults>
</compile_context>

<pallas_src>
import functools

import jax
import jax.numpy as jnp
from jax import lax
from jax.experimental import pallas as pl
from jax.experimental.pallas import tpu as pltpu

# ----------------------------- problem sizes (demo) -----------------------------
N_SRC = 128      # source nodes in the block
N_DST = 64       # destination nodes (prefix of the src nodes)
K = 8            # fixed in-degree per dst node (mailbox size)
IN_DIM = 32
OUT_DIM = 32
TILE_DST = 16    # dst rows per grid step
USE_RESIDUAL = True


def _round_up(x, m):
    return (x + m - 1) // m * m


# --------------------------- fused forward kernel --------------------------
def tem_agg_kernel(feat_ref, waug_ref, nbr_ref, out_ref, *,
                   n_src, out_pad, k, tile_dst, inv_tau, use_residual, mxu_bf16):
    mxu_dtype = jnp.bfloat16 if mxu_bf16 else jnp.float32

    feat = feat_ref[...].astype(mxu_dtype)            # (n_src, in_dim+1): [features | t]
    w = waug_ref[...].astype(mxu_dtype)                # (in_dim+1, out_pad+2)

    # 1) augmented projection on the MXU (one matmul): [ z (128-padded) | s | t ]
    z_aug = jnp.dot(feat, w, preferred_element_type=jnp.float32)       # (n_src, out_pad+2)
    z_aug_m = z_aug.astype(mxu_dtype)

    # 2) same projection restricted to this tile's dst rows (dst nodes = first src rows)
    #    -> residual z_dst and t_dst with no extra inputs / DMAs.
    start = pl.multiple_of(pl.program_id(0) * tile_dst, tile_dst)
    feat_dst = feat_ref[pl.ds(start, tile_dst), :].astype(mxu_dtype)
    zd_aug = jnp.dot(feat_dst, w, preferred_element_type=jnp.float32)  # (tile_dst, out_pad+2)
    z_dst = zd_aug[:, :out_pad]
    t_dst = zd_aug[:, out_pad + 1:out_pad + 2]                         # (tile_dst, 1)

    # 3) per-neighbor-slot one-hot gather on the MXU + per-edge attention logits (f32).
    idx = nbr_ref[...]                                                 # (tile_dst, k) int32
    lane = lax.broadcasted_iota(jnp.int32, (tile_dst, n_src), 1)

    z_nbr = []
    logits = []
    for kk in range(k):    # k is small and static -> unrolled at trace time
        onehot_k = (lane == idx[:, kk:kk + 1]).astype(jnp.float32).astype(mxu_dtype)
        g = jnp.dot(onehot_k, z_aug_m,
                    preferred_element_type=jnp.float32)                # (tile_dst, out_pad+2)
        z_nbr.append(g[:, :out_pad])
        s_k = g[:, out_pad:out_pad + 1]                                # (tile_dst, 1)
        t_k = g[:, out_pad + 1:out_pad + 2]
        e_k = -jnp.abs(t_k - t_dst)
        logits.append(jnp.exp(s_k * e_k * inv_tau))    # first exp (reference exponentiates twice)

    # 4) softmax over the K neighbor slots (f32 on VPU/EUP; exact reciprocal per review).
    m = logits[0]
    for kk in range(1, k):
        m = jnp.maximum(m, logits[kk])
    p = [jnp.exp(l - m) for l in logits]
    denom = p[0]
    for kk in range(1, k):
        denom = denom + p[kk]
    inv_denom = 1.0 / denom

    # 5) aggregate + residual; single lane-dense (tile_dst, 128) store.
    h = (p[0] * inv_denom) * z_nbr[0]
    for kk in range(1, k):
        h = h + (p[kk] * inv_denom) * z_nbr[kk]
    if use_residual:
        h = h + z_dst
    out_ref[...] = h


# --------------------------------- wrapper ---------------------------------
def tem_agg_forward(features, t, nbr_idx, w_fc, w_temp,
                    use_residual=True, mxu_bf16=True, tile_dst=TILE_DST):
    """features: (N_SRC, IN_DIM) f32; t: (N_SRC,) f32; nbr_idx: (N_DST, K) int32;
       w_fc: (OUT_DIM, IN_DIM) torch layout; w_temp: (1, OUT_DIM)."""
    f32 = jnp.float32
    n_src, in_dim = features.shape
    n_dst, k = nbr_idx.shape
    out_dim = w_fc.shape[0]
    assert n_dst % tile_dst == 0, "demo wrapper assumes N_DST % TILE_DST == 0"
    out_pad = _round_up(max(out_dim, 128), 128)        # lane-dense output width

    # Augmented inputs built once on the host side:
    #   feat_aug = [ features | t ]                                  (n_src, in_dim+1)
    #   w_aug    = [ W_fc^T (0-padded to out_pad lanes) | W_fc^T w_temp^T | 0 ]
    #              [ 0                                  | 0               | 1 ]
    feat_aug = jnp.concatenate([features.astype(f32), t.astype(f32)[:, None]], axis=1)
    w_fc_t = w_fc.T.astype(f32)                                        # (in_dim, out_dim)
    w_aug = jnp.zeros((in_dim + 1, out_pad + 2), f32)
    w_aug = w_aug.at[:in_dim, :out_dim].set(w_fc_t)
    w_aug = w_aug.at[:in_dim, out_pad].set(w_fc_t @ w_temp[0].astype(f32))
    w_aug = w_aug.at[in_dim, out_pad + 1].set(1.0)

    kernel = functools.partial(
        tem_agg_kernel, n_src=n_src, out_pad=out_pad, k=k, tile_dst=tile_dst,
        inv_tau=1.0 / 500.0, use_residual=use_residual, mxu_bf16=mxu_bf16)

    out = pl.pallas_call(
        kernel,
        out_shape=jax.ShapeDtypeStruct((n_dst, out_pad), f32),
        grid=(n_dst // tile_dst,),
        in_specs=[
            pl.BlockSpec((n_src, in_dim + 1), lambda i: (0, 0)),        # resident, fetched once
            pl.BlockSpec((in_dim + 1, out_pad + 2), lambda i: (0, 0)),  # resident, fetched once
            pl.BlockSpec((tile_dst, k), lambda i: (i, 0)),              # per-tile neighbor table
        ],
        out_specs=pl.BlockSpec((tile_dst, out_pad), lambda i: (i, 0)),
        compiler_params=pltpu.CompilerParams(
            dimension_semantics=("parallel",)),    # v7x megacore shards the dst-tile axis
    )(feat_aug, w_aug, nbr_idx)
    return out[:, :out_dim]


# --------------------------- pure-JAX reference ---------------------------
def reference_forward(features, t, nbr_idx, w_fc, w_temp, use_residual=True):
    hp = lax.Precision.HIGHEST
    z = jnp.dot(features, w_fc.T, precision=hp)
    n_dst = nbr_idx.shape[0]
    z_dst = z[:n_dst]
    z_nbr = z[nbr_idx]                                          # (n_dst, K, out_dim)
    e = -jnp.abs(t[nbr_idx] - t[:n_dst][:, None])               # (n_dst, K)
    s = jnp.einsum("nkd,d->nk", z_nbr, w_temp[0], precision=hp)
    alpha = jax.nn.softmax(jnp.exp(s * e / 500.0), axis=1)
    h = jnp.sum(alpha[..., None] * z_nbr, axis=1)
    return z_dst + h if use_residual else h


# --------------------------------- main ------------------------------------
if __name__ == "__main__":
    key = jax.random.PRNGKey(0)
    k_feat, k_t, k_nbr, k_fc, k_temp = jax.random.split(key, 5)

    features = jax.random.normal(k_feat, (N_SRC, IN_DIM), dtype=jnp.float32)
    # Moderate time range keeps the exp/softmax chain well conditioned for the
    # bf16-MXU numeric check below (the layer's own /500 scaling assumes O(100) deltas).
    t = jax.random.uniform(k_t, (N_SRC,), dtype=jnp.float32, minval=0.0, maxval=128.0)
    nbr_idx = jax.random.randint(k_nbr, (N_DST, K), 0, N_SRC, dtype=jnp.int32)

    # fc: xavier_normal_ with gain for 'relu' (= sqrt(2)), no bias
    gain = 2.0 ** 0.5
    std = gain * (2.0 / (IN_DIM + OUT_DIM)) ** 0.5
    w_fc = std * jax.random.normal(k_fc, (OUT_DIM, IN_DIM), dtype=jnp.float32)
    # temporal_fc: default nn.Linear init ~ U(-1/sqrt(fan_in), 1/sqrt(fan_in))
    bound = 1.0 / (OUT_DIM ** 0.5)
    w_temp = jax.random.uniform(k_temp, (1, OUT_DIM), dtype=jnp.float32,
                                minval=-bound, maxval=bound)

    ref = reference_forward(features, t, nbr_idx, w_fc, w_temp, USE_RESIDUAL)

    # f32-MXU path: validates kernel structure against the reference.
    out_f32 = jax.block_until_ready(
        tem_agg_forward(features, t, nbr_idx, w_fc, w_temp,
                        use_residual=USE_RESIDUAL, mxu_bf16=False))
    assert out_f32.shape == (N_DST, OUT_DIM)
    err_f32 = float(jnp.max(jnp.abs(out_f32 - ref)))
    assert jnp.allclose(out_f32, ref, rtol=2e-3, atol=2e-3), \
        f"f32 path max abs err {err_f32}"

    # bf16-MXU path (perf-review item): tolerance covers bf16 operand rounding only;
    # all softmax / elementwise math stays f32 in both paths.
    out_bf16 = jax.block_until_ready(
        tem_agg_forward(features, t, nbr_idx, w_fc, w_temp,
                        use_residual=USE_RESIDUAL, mxu_bf16=True))
    assert out_bf16.shape == (N_DST, OUT_DIM)
    err_bf16 = float(jnp.max(jnp.abs(out_bf16 - ref)))
    assert jnp.allclose(out_bf16, ref, rtol=5e-2, atol=5e-2), \
        f"bf16 path max abs err {err_bf16}"

    print("KERNEL_OK")
</pallas_src>

<mosaic_0001>
module attributes {stable_mosaic.version = 11 : i64} {
  func.func @tem_agg_kernel(%arg0: i32, %arg1: memref<128x33xf32, #tpu.memory_space<vmem>>, %arg2: memref<33x130xf32, #tpu.memory_space<vmem>>, %arg3: memref<16x8xi32, #tpu.memory_space<vmem>>, %arg4: memref<16x128xf32, #tpu.memory_space<vmem>>) attributes {dimension_semantics = [#tpu.dimension_semantics<parallel>], iteration_bounds = array<i64: 4>, scalar_prefetch = 0 : i64, scratch_operands = 0 : i64, tpu.core_type = #tpu.core_type<tc>, window_params = [{pipeline_mode = #tpu.pipeline_mode<synchronous>, transform_indices = @transform_0, window_bounds = array<i64: 128, 33>}, {pipeline_mode = #tpu.pipeline_mode<synchronous>, transform_indices = @transform_1, window_bounds = array<i64: 33, 130>}, {transform_indices = @transform_2, window_bounds = array<i64: 16, 8>}, {transform_indices = @transform_3, window_bounds = array<i64: 16, 128>}]} {
    %c0 = arith.constant 0 : index
    %c0_0 = arith.constant 0 : index
    %0 = vector.load %arg1[%c0, %c0_0] : memref<128x33xf32, #tpu.memory_space<vmem>>, vector<128x33xf32>
    %c0_1 = arith.constant 0 : index
    %c0_2 = arith.constant 0 : index
    %1 = vector.load %arg2[%c0_1, %c0_2] : memref<33x130xf32, #tpu.memory_space<vmem>>, vector<33x130xf32>
    %cst = arith.constant dense<0.000000e+00> : vector<128x130xf32>
    %2 = tpu.matmul %0, %1, %cst {dimension_numbers = #tpu.dot_dimension_numbers<[1], [0], [0], [1], [0, 0, 1, 1], [], []>} : vector<128x33xf32>, vector<33x130xf32>, vector<128x130xf32> -> vector<128x130xf32>
    %c16_i32 = arith.constant 16 : i32
    %3 = arith.muli %arg0, %c16_i32 : i32
    %4 = tpu.assume_multiple %3, 16 : i32
    %5 = arith.index_cast %4 : i32 to index
    %c0_3 = arith.constant 0 : index
    %6 = vector.load %arg1[%5, %c0_3] : memref<128x33xf32, #tpu.memory_space<vmem>>, vector<16x33xf32>
    %cst_4 = arith.constant dense<0.000000e+00> : vector<16x130xf32>
    %7 = tpu.matmul %6, %1, %cst_4 {dimension_numbers = #tpu.dot_dimension_numbers<[1], [0], [0], [1], [0, 0, 1, 1], [], []>} : vector<16x33xf32>, vector<33x130xf32>, vector<16x130xf32> -> vector<16x130xf32>
    %8 = vector.extract_strided_slice %7 {offsets = [0, 0], sizes = [16, 128], strides = [1, 1]} : vector<16x130xf32> to vector<16x128xf32>
    %9 = vector.extract_strided_slice %7 {offsets = [0, 129], sizes = [16, 1], strides = [1, 1]} : vector<16x130xf32> to vector<16x1xf32>
    %c0_5 = arith.constant 0 : index
    %c0_6 = arith.constant 0 : index
    %10 = vector.load %arg3[%c0_5, %c0_6] : memref<16x8xi32, #tpu.memory_space<vmem>>, vector<16x8xi32>
    %11 = tpu.iota {dimensions = array<i32: 1>} : vector<16x128xi32>
    %12 = vector.extract_strided_slice %10 {offsets = [0, 0], sizes = [16, 1], strides = [1, 1]} : vector<16x8xi32> to vector<16x1xi32>
    %13 = vector.broadcast %12 : vector<16x1xi32> to vector<16x128xi32>
    %14 = arith.cmpi eq, %11, %13 : vector<16x128xi32>
    %15 = arith.extui %14 : vector<16x128xi1> to vector<16x128xi32>
    %16 = arith.sitofp %15 : vector<16x128xi32> to vector<16x128xf32>
    %cst_7 = arith.constant dense<0.000000e+00> : vector<16x130xf32>
    %17 = tpu.matmul %16, %2, %cst_7 {dimension_numbers = #tpu.dot_dimension_numbers<[1], [0], [0], [1], [0, 0, 1, 1], [], []>} : vector<16x128xf32>, vector<128x130xf32>, vector<16x130xf32> -> vector<16x130xf32>
    %18 = vector.extract_strided_slice %17 {offsets = [0, 0], sizes = [16, 128], strides = [1, 1]} : vector<16x130xf32> to vector<16x128xf32>
    %19 = vector.extract_strided_slice %17 {offsets = [0, 128], sizes = [16, 1], strides = [1, 1]} : vector<16x130xf32> to vector<16x1xf32>
    %20 = vector.extract_strided_slice %17 {offsets = [0, 129], sizes = [16, 1], strides = [1, 1]} : vector<16x130xf32> to vector<16x1xf32>
    %21 = arith.subf %20, %9 : vector<16x1xf32>
    %22 = math.absf %21 : vector<16x1xf32>
    %cst_8 = arith.constant 0.000000e+00 : f32
    %23 = vector.broadcast %cst_8 : f32 to vector<16x1xf32>
    %24 = arith.subf %23, %22 : vector<16x1xf32>
    %25 = arith.mulf %19, %24 : vector<16x1xf32>
    %cst_9 = arith.constant 2.000000e-03 : f32
    %26 = vector.broadcast %cst_9 : f32 to vector<16x1xf32>
    %27 = arith.mulf %25, %26 : vector<16x1xf32>
    %28 = math.exp %27 : vector<16x1xf32>
    %29 = vector.extract_strided_slice %10 {offsets = [0, 1], sizes = [16, 1], strides = [1, 1]} : vector<16x8xi32> to vector<16x1xi32>
    %30 = vector.broadcast %29 : vector<16x1xi32> to vector<16x128xi32>
    %31 = arith.cmpi eq, %11, %30 : vector<16x128xi32>
    %32 = arith.extui %31 : vector<16x128xi1> to vector<16x128xi32>
    %33 = arith.sitofp %32 : vector<16x128xi32> to vector<16x128xf32>
    %cst_10 = arith.constant dense<0.000000e+00> : vector<16x130xf32>
    %34 = tpu.matmul %33, %2, %cst_10 {dimension_numbers = #tpu.dot_dimension_numbers<[1], [0], [0], [1], [0, 0, 1, 1], [], []>} : vector<16x128xf32>, vector<128x130xf32>, vector<16x130xf32> -> vector<16x130xf32>
    %35 = vector.extract_strided_slice %34 {offsets = [0, 0], sizes = [16, 128], strides = [1, 1]} : vector<16x130xf32> to vector<16x128xf32>
    %36 = vector.extract_strided_slice %34 {offsets = [0, 128], sizes = [16, 1], strides = [1, 1]} : vector<16x130xf32> to vector<16x1xf32>
    %37 = vector.extract_strided_slice %34 {offsets = [0, 129], sizes = [16, 1], strides = [1, 1]} : vector<16x130xf32> to vector<16x1xf32>
    %38 = arith.subf %37, %9 : vector<16x1xf32>
    %39 = math.absf %38 : vector<16x1xf32>
    %cst_11 = arith.constant 0.000000e+00 : f32
    %40 = vector.broadcast %cst_11 : f32 to vector<16x1xf32>
    %41 = arith.subf %40, %39 : vector<16x1xf32>
    %42 = arith.mulf %36, %41 : vector<16x1xf32>
    %cst_12 = arith.constant 2.000000e-03 : f32
    %43 = vector.broadcast %cst_12 : f32 to vector<16x1xf32>
    %44 = arith.mulf %42, %43 : vector<16x1xf32>
    %45 = math.exp %44 : vector<16x1xf32>
    %46 = vector.extract_strided_slice %10 {offsets = [0, 2], sizes = [16, 1], strides = [1, 1]} : vector<16x8xi32> to vector<16x1xi32>
    %47 = vector.broadcast %46 : vector<16x1xi32> to vector<16x128xi32>
    %48 = arith.cmpi eq, %11, %47 : vector<16x128xi32>
    %49 = arith.extui %48 : vector<16x128xi1> to vector<16x128xi32>
    %50 = arith.sitofp %49 : vector<16x128xi32> to vector<16x128xf32>
    %cst_13 = arith.constant dense<0.000000e+00> : vector<16x130xf32>
    %51 = tpu.matmul %50, %2, %cst_13 {dimension_numbers = #tpu.dot_dimension_numbers<[1], [0], [0], [1], [0, 0, 1, 1], [], []>} : vector<16x128xf32>, vector<128x130xf32>, vector<16x130xf32> -> vector<16x130xf32>
    %52 = vector.extract_strided_slice %51 {offsets = [0, 0], sizes = [16, 128], strides = [1, 1]} : vector<16x130xf32> to vector<16x128xf32>
    %53 = vector.extract_strided_slice %51 {offsets = [0, 128], sizes = [16, 1], strides = [1, 1]} : vector<16x130xf32> to vector<16x1xf32>
    %54 = vector.extract_strided_slice %51 {offsets = [0, 129], sizes = [16, 1], strides = [1, 1]} : vector<16x130xf32> to vector<16x1xf32>
    %55 = arith.subf %54, %9 : vector<16x1xf32>
    %56 = math.absf %55 : vector<16x1xf32>
    %cst_14 = arith.constant 0.000000e+00 : f32
    %57 = vector.broadcast %cst_14 : f32 to vector<16x1xf32>
    %58 = arith.subf %57, %56 : vector<16x1xf32>
    %59 = arith.mulf %53, %58 : vector<16x1xf32>
    %cst_15 = arith.constant 2.000000e-03 : f32
    %60 = vector.broadcast %cst_15 : f32 to vector<16x1xf32>
    %61 = arith.mulf %59, %60 : vector<16x1xf32>
    %62 = math.exp %61 : vector<16x1xf32>
    %63 = vector.extract_strided_slice %10 {offsets = [0, 3], sizes = [16, 1], strides = [1, 1]} : vector<16x8xi32> to vector<16x1xi32>
    %64 = vector.broadcast %63 : vector<16x1xi32> to vector<16x128xi32>
    %65 = arith.cmpi eq, %11, %64 : vector<16x128xi32>
    %66 = arith.extui %65 : vector<16x128xi1> to vector<16x128xi32>
    %67 = arith.sitofp %66 : vector<16x128xi32> to vector<16x128xf32>
    %cst_16 = arith.constant dense<0.000000e+00> : vector<16x130xf32>
    %68 = tpu.matmul %67, %2, %cst_16 {dimension_numbers = #tpu.dot_dimension_numbers<[1], [0], [0], [1], [0, 0, 1, 1], [], []>} : vector<16x128xf32>, vector<128x130xf32>, vector<16x130xf32> -> vector<16x130xf32>
    %69 = vector.extract_strided_slice %68 {offsets = [0, 0], sizes = [16, 128], strides = [1, 1]} : vector<16x130xf32> to vector<16x128xf32>
    %70 = vector.extract_strided_slice %68 {offsets = [0, 128], sizes = [16, 1], strides = [1, 1]} : vector<16x130xf32> to vector<16x1xf32>
    %71 = vector.extract_strided_slice %68 {offsets = [0, 129], sizes = [16, 1], strides = [1, 1]} : vector<16x130xf32> to vector<16x1xf32>
    %72 = arith.subf %71, %9 : vector<16x1xf32>
    %73 = math.absf %72 : vector<16x1xf32>
    %cst_17 = arith.constant 0.000000e+00 : f32
    %74 = vector.broadcast %cst_17 : f32 to vector<16x1xf32>
    %75 = arith.subf %74, %73 : vector<16x1xf32>
    %76 = arith.mulf %70, %75 : vector<16x1xf32>
    %cst_18 = arith.constant 2.000000e-03 : f32
    %77 = vector.broadcast %cst_18 : f32 to vector<16x1xf32>
    %78 = arith.mulf %76, %77 : vector<16x1xf32>
    %79 = math.exp %78 : vector<16x1xf32>
    %80 = vector.extract_strided_slice %10 {offsets = [0, 4], sizes = [16, 1], strides = [1, 1]} : vector<16x8xi32> to vector<16x1xi32>
    %81 = vector.broadcast %80 : vector<16x1xi32> to vector<16x128xi32>
    %82 = arith.cmpi eq, %11, %81 : vector<16x128xi32>
    %83 = arith.extui %82 : vector<16x128xi1> to vector<16x128xi32>
    %84 = arith.sitofp %83 : vector<16x128xi32> to vector<16x128xf32>
    %cst_19 = arith.constant dense<0.000000e+00> : vector<16x130xf32>
    %85 = tpu.matmul %84, %2, %cst_19 {dimension_numbers = #tpu.dot_dimension_numbers<[1], [0], [0], [1], [0, 0, 1, 1], [], []>} : vector<16x128xf32>, vector<128x130xf32>, vector<16x130xf32> -> vector<16x130xf32>
    %86 = vector.extract_strided_slice %85 {offsets = [0, 0], sizes = [16, 128], strides = [1, 1]} : vector<16x130xf32> to vector<16x128xf32>
    %87 = vector.extract_strided_slice %85 {offsets = [0, 128], sizes = [16, 1], strides = [1, 1]} : vector<16x130xf32> to vector<16x1xf32>
    %88 = vector.extract_strided_slice %85 {offsets = [0, 129], sizes = [16, 1], strides = [1, 1]} : vector<16x130xf32> to vector<16x1xf32>
    %89 = arith.subf %88, %9 : vector<16x1xf32>
    %90 = math.absf %89 : vector<16x1xf32>
    %cst_20 = arith.constant 0.000000e+00 : f32
    %91 = vector.broadcast %cst_20 : f32 to vector<16x1xf32>
    %92 = arith.subf %91, %90 : vector<16x1xf32>
    %93 = arith.mulf %87, %92 : vector<16x1xf32>
    %cst_21 = arith.constant 2.000000e-03 : f32
    %94 = vector.broadcast %cst_21 : f32 to vector<16x1xf32>
    %95 = arith.mulf %93, %94 : vector<16x1xf32>
    %96 = math.exp %95 : vector<16x1xf32>
    %97 = vector.extract_strided_slice %10 {offsets = [0, 5], sizes = [16, 1], strides = [1, 1]} : vector<16x8xi32> to vector<16x1xi32>
    %98 = vector.broadcast %97 : vector<16x1xi32> to vector<16x128xi32>
    %99 = arith.cmpi eq, %11, %98 : vector<16x128xi32>
    %100 = arith.extui %99 : vector<16x128xi1> to vector<16x128xi32>
    %101 = arith.sitofp %100 : vector<16x128xi32> to vector<16x128xf32>
    %cst_22 = arith.constant dense<0.000000e+00> : vector<16x130xf32>
    %102 = tpu.matmul %101, %2, %cst_22 {dimension_numbers = #tpu.dot_dimension_numbers<[1], [0], [0], [1], [0, 0, 1, 1], [], []>} : vector<16x128xf32>, vector<128x130xf32>, vector<16x130xf32> -> vector<16x130xf32>
    %103 = vector.extract_strided_slice %102 {offsets = [0, 0], sizes = [16, 128], strides = [1, 1]} : vector<16x130xf32> to vector<16x128xf32>
    %104 = vector.extract_strided_slice %102 {offsets = [0, 128], sizes = [16, 1], strides = [1, 1]} : vector<16x130xf32> to vector<16x1xf32>
    %105 = vector.extract_strided_slice %102 {offsets = [0, 129], sizes = [16, 1], strides = [1, 1]} : vector<16x130xf32> to vector<16x1xf32>
    %106 = arith.subf %105, %9 : vector<16x1xf32>
    %107 = math.absf %106 : vector<16x1xf32>
    %cst_23 = arith.constant 0.000000e+00 : f32
    %108 = vector.broadcast %cst_23 : f32 to vector<16x1xf32>
    %109 = arith.subf %108, %107 : vector<16x1xf32>
    %110 = arith.mulf %104, %109 : vector<16x1xf32>
    %cst_24 = arith.constant 2.000000e-03 : f32
    %111 = vector.broadcast %cst_24 : f32 to vector<16x1xf32>
    %112 = arith.mulf %110, %111 : vector<16x1xf32>
    %113 = math.exp %112 : vector<16x1xf32>
    %114 = vector.extract_strided_slice %10 {offsets = [0, 6], sizes = [16, 1], strides = [1, 1]} : vector<16x8xi32> to vector<16x1xi32>
    %115 = vector.broadcast %114 : vector<16x1xi32> to vector<16x128xi32>
    %116 = arith.cmpi eq, %11, %115 : vector<16x128xi32>
    %117 = arith.extui %116 : vector<16x128xi1> to vector<16x128xi32>
    %118 = arith.sitofp %117 : vector<16x128xi32> to vector<16x128xf32>
    %cst_25 = arith.constant dense<0.000000e+00> : vector<16x130xf32>
    %119 = tpu.matmul %118, %2, %cst_25 {dimension_numbers = #tpu.dot_dimension_numbers<[1], [0], [0], [1], [0, 0, 1, 1], [], []>} : vector<16x128xf32>, vector<128x130xf32>, vector<16x130xf32> -> vector<16x130xf32>
    %120 = vector.extract_strided_slice %119 {offsets = [0, 0], sizes = [16, 128], strides = [1, 1]} : vector<16x130xf32> to vector<16x128xf32>
    %121 = vector.extract_strided_slice %119 {offsets = [0, 128], sizes = [16, 1], strides = [1, 1]} : vector<16x130xf32> to vector<16x1xf32>
    %122 = vector.extract_strided_slice %119 {offsets = [0, 129], sizes = [16, 1], strides = [1, 1]} : vector<16x130xf32> to vector<16x1xf32>
    %123 = arith.subf %122, %9 : vector<16x1xf32>
    %124 = math.absf %123 : vector<16x1xf32>
    %cst_26 = arith.constant 0.000000e+00 : f32
    %125 = vector.broadcast %cst_26 : f32 to vector<16x1xf32>
    %126 = arith.subf %125, %124 : vector<16x1xf32>
    %127 = arith.mulf %121, %126 : vector<16x1xf32>
    %cst_27 = arith.constant 2.000000e-03 : f32
    %128 = vector.broadcast %cst_27 : f32 to vector<16x1xf32>
    %129 = arith.mulf %127, %128 : vector<16x1xf32>
    %130 = math.exp %129 : vector<16x1xf32>
    %131 = vector.extract_strided_slice %10 {offsets = [0, 7], sizes = [16, 1], strides = [1, 1]} : vector<16x8xi32> to vector<16x1xi32>
    %132 = vector.broadcast %131 : vector<16x1xi32> to vector<16x128xi32>
    %133 = arith.cmpi eq, %11, %132 : vector<16x128xi32>
    %134 = arith.extui %133 : vector<16x128xi1> to vector<16x128xi32>
    %135 = arith.sitofp %134 : vector<16x128xi32> to vector<16x128xf32>
    %cst_28 = arith.constant dense<0.000000e+00> : vector<16x130xf32>
    %136 = tpu.matmul %135, %2, %cst_28 {dimension_numbers = #tpu.dot_dimension_numbers<[1], [0], [0], [1], [0, 0, 1, 1], [], []>} : vector<16x128xf32>, vector<128x130xf32>, vector<16x130xf32> -> vector<16x130xf32>
    %137 = vector.extract_strided_slice %136 {offsets = [0, 0], sizes = [16, 128], strides = [1, 1]} : vector<16x130xf32> to vector<16x128xf32>
    %138 = vector.extract_strided_slice %136 {offsets = [0, 128], sizes = [16, 1], strides = [1, 1]} : vector<16x130xf32> to vector<16x1xf32>
    %139 = vector.extract_strided_slice %136 {offsets = [0, 129], sizes = [16, 1], strides = [1, 1]} : vector<16x130xf32> to vector<16x1xf32>
    %140 = arith.subf %139, %9 : vector<16x1xf32>
    %141 = math.absf %140 : vector<16x1xf32>
    %cst_29 = arith.constant 0.000000e+00 : f32
    %142 = vector.broadcast %cst_29 : f32 to vector<16x1xf32>
    %143 = arith.subf %142, %141 : vector<16x1xf32>
    %144 = arith.mulf %138, %143 : vector<16x1xf32>
    %cst_30 = arith.constant 2.000000e-03 : f32
    %145 = vector.broadcast %cst_30 : f32 to vector<16x1xf32>
    %146 = arith.mulf %144, %145 : vector<16x1xf32>
    %147 = math.exp %146 : vector<16x1xf32>
    %148 = arith.maximumf %28, %45 : vector<16x1xf32>
    %149 = arith.maximumf %148, %62 : vector<16x1xf32>
    %150 = arith.maximumf %149, %79 : vector<16x1xf32>
    %151 = arith.maximumf %150, %96 : vector<16x1xf32>
    %152 = arith.maximumf %151, %113 : vector<16x1xf32>
    %153 = arith.maximumf %152, %130 : vector<16x1xf32>
    %154 = arith.maximumf %153, %147 : vector<16x1xf32>
    %155 = arith.subf %28, %154 : vector<16x1xf32>
    %156 = math.exp %155 : vector<16x1xf32>
    %157 = arith.subf %45, %154 : vector<16x1xf32>
    %158 = math.exp %157 : vector<16x1xf32>
    %159 = arith.subf %62, %154 : vector<16x1xf32>
    %160 = math.exp %159 : vector<16x1xf32>
    %161 = arith.subf %79, %154 : vector<16x1xf32>
    %162 = math.exp %161 : vector<16x1xf32>
    %163 = arith.subf %96, %154 : vector<16x1xf32>
    %164 = math.exp %163 : vector<16x1xf32>
    %165 = arith.subf %113, %154 : vector<16x1xf32>
    %166 = math.exp %165 : vector<16x1xf32>
    %167 = arith.subf %130, %154 : vector<16x1xf32>
    %168 = math.exp %167 : vector<16x1xf32>
    %169 = arith.subf %147, %154 : vector<16x1xf32>
    %170 = math.exp %169 : vector<16x1xf32>
    %171 = arith.addf %156, %158 : vector<16x1xf32>
    %172 = arith.addf %171, %160 : vector<16x1xf32>
    %173 = arith.addf %172, %162 : vector<16x1xf32>
    %174 = arith.addf %173, %164 : vector<16x1xf32>
    %175 = arith.addf %174, %166 : vector<16x1xf32>
    %176 = arith.addf %175, %168 : vector<16x1xf32>
    %177 = arith.addf %176, %170 : vector<16x1xf32>
    %cst_31 = arith.constant 1.000000e+00 : f32
    %178 = vector.broadcast %cst_31 : f32 to vector<16x1xf32>
    %179 = arith.divf %178, %177 : vector<16x1xf32>
    %180 = arith.mulf %156, %179 : vector<16x1xf32>
    %181 = vector.broadcast %180 : vector<16x1xf32> to vector<16x128xf32>
    %182 = arith.mulf %181, %18 : vector<16x128xf32>
    %183 = arith.mulf %158, %179 : vector<16x1xf32>
    %184 = vector.broadcast %183 : vector<16x1xf32> to vector<16x128xf32>
    %185 = arith.mulf %184, %35 : vector<16x128xf32>
    %186 = arith.addf %182, %185 : vector<16x128xf32>
    %187 = arith.mulf %160, %179 : vector<16x1xf32>
    %188 = vector.broadcast %187 : vector<16x1xf32> to vector<16x128xf32>
    %189 = arith.mulf %188, %52 : vector<16x128xf32>
    %190 = arith.addf %186, %189 : vector<16x128xf32>
    %191 = arith.mulf %162, %179 : vector<16x1xf32>
    %192 = vector.broadcast %191 : vector<16x1xf32> to vector<16x128xf32>
    %193 = arith.mulf %192, %69 : vector<16x128xf32>
    %194 = arith.addf %190, %193 : vector<16x128xf32>
    %195 = arith.mulf %164, %179 : vector<16x1xf32>
    %196 = vector.broadcast %195 : vector<16x1xf32> to vector<16x128xf32>
    %197 = arith.mulf %196, %86 : vector<16x128xf32>
    %198 = arith.addf %194, %197 : vector<16x128xf32>
    %199 = arith.mulf %166, %179 : vector<16x1xf32>
    %200 = vector.broadcast %199 : vector<16x1xf32> to vector<16x128xf32>
    %201 = arith.mulf %200, %103 : vector<16x128xf32>
    %202 = arith.addf %198, %201 : vector<16x128xf32>
    %203 = arith.mulf %168, %179 : vector<16x1xf32>
    %204 = vector.broadcast %203 : vector<16x1xf32> to vector<16x128xf32>
    %205 = arith.mulf %204, %120 : vector<16x128xf32>
    %206 = arith.addf %202, %205 : vector<16x128xf32>
    %207 = arith.mulf %170, %179 : vector<16x1xf32>
    %208 = vector.broadcast %207 : vector<16x1xf32> to vector<16x128xf32>
    %209 = arith.mulf %208, %137 : vector<16x128xf32>
    %210 = arith.addf %206, %209 : vector<16x128xf32>
    %211 = arith.addf %210, %8 : vector<16x128xf32>
    %c0_32 = arith.constant 0 : index
    %c0_33 = arith.constant 0 : index
    %212 = vector.load %arg4[%c0_32, %c0_33] : memref<16x128xf32, #tpu.memory_space<vmem>>, vector<16x128xf32>
    tpu.vector_store %arg4[%c0_32, %c0_33], %211 {strides = array<i32>} : memref<16x128xf32, #tpu.memory_space<vmem>>, vector<16x128xf32>,
    return
  }
  func.func @transform_0(%arg0: i32) -> (i32, i32) {
    %c0_i32 = arith.constant 0 : i32
    %c0_i32_0 = arith.constant 0 : i32
    %c0_i32_1 = arith.constant 0 : i32
    return %c0_i32, %c0_i32_0 : i32, i32
  }
  func.func @transform_1(%arg0: i32) -> (i32, i32) {
    %c0_i32 = arith.constant 0 : i32
    %c0_i32_0 = arith.constant 0 : i32
    %c0_i32_1 = arith.constant 0 : i32
    return %c0_i32, %c0_i32_0 : i32, i32
  }
  func.func @transform_2(%arg0: i32) -> (i32, i32) {
    %c0_i32 = arith.constant 0 : i32
    %c0_i32_0 = arith.constant 0 : i32
    return %arg0, %c0_i32 : i32, i32
  }
  func.func @transform_3(%arg0: i32) -> (i32, i32) {
    %c0_i32 = arith.constant 0 : i32
    %c0_i32_0 = arith.constant 0 : i32
    return %arg0, %c0_i32 : i32, i32
  }
}

</mosaic_0001>

<bundles_post_ra>
// kernel: tpu_custom_call.1
= control target key start
LH: loop header
LB: loop body
LE: loop exit
PB: predicated region body
PF: predicated region fallthrough
CT: control target
= control target key end

     0   :  { %8 = vsyncpa [#allocation3], 0  ;;  %s2931_s0 = inlined_call_operand.vmem [shape: f32[128,33], index: 0, kind: input, shape index: {}]   ;;  %s2932_s1 = inlined_call_operand.vmem [shape: f32[33,130], index: 1, kind: input, shape index: {}]   ;;  %s2933_s2 = inlined_call_operand.vmem [shape: s32[64,8], index: 2, kind: input, shape index: {}]   ;;  %s2934_s3 = inlined_call_operand.hbm [shape: f32[64,128], index: 3, kind: output, shape index: {}]  }
   0x1   :  { %10 = vsyncpa [#allocation3 + $0x1], 0  ;;  %s2262_s12 = smov 0   ;;  %s2264_s13 = smov 0  }
   0x2   :  { %s2266_s14 = smov 0   ;;  %s2268_s15 = smov 0  }
   0x3 LB: > { %s2283_s16 = sadd.s32 4294967295, %s2226_s15   ;;  %s1682_s17 = sadd.s32 4294967294, %s2226_s15   ;;  %s2226_s15 = sphi %s2268_s15, %s2940_s15   ;;  %s2222_s14 = sphi %s2266_s14, %s2939_s14   ;;  %s2218_s13 = sphi %s2264_s13, %s2938_s13   ;;  %s2214_s12 = sphi %s2262_s12, %s2937_s12  }
   0x4   : > { %s2287_s18 = sadd.s32 1, %s2226_s15   ;;  %s91_s19 = sadd.s32 1, %s2222_s14 }
   0x5   : > { %s88_s20 = ssub.s32 %s2226_s15, %s2287_s18  ;;  %p101_p0 = scmp.ne.s32.totalorder %s2222_s14, %s2218_s13 }
   0x6   : > { %p89_p1 = scmp.eq.s32.totalorder %s88_s20, 0  ;;  %p102_p2 = scmp.eq.s32.totalorder %s2283_s16, 3 }
   0x7   : > { %p107_p3 = scmp.ne.s32.totalorder %s2218_s13, %s2214_s12  ;;  %p108_p4 = scmp.eq.s32.totalorder %s1682_s17, 3 }
   0x8   : > { %s2298_s21 = scalar_select %p89_p1, %s2222_s14, %s91_s19  }
   0x9   : > { %p2300_p5 = por %p102_p2, %p101_p0  ;;  %p2304_p6 = por %p108_p4, %p107_p3 }
   0xa   : > { %p1685_p7 = scmp.ge.s32.totalorder %s2226_s15, 1  ;;  %p141_p8 = scmp.lt.s32.totalorder %s2226_s15, 5 }
   0xc   : > { %p142_p9 = pnand %p1685_p7, %p141_p8 }
   0xd   : > { %v189_v0 = vld [vmem:[%s2932_s1 + $0x8] sm:$0xff] (!%p142_p9)  ;;  %v191_v1 = vld [vmem:[%s2932_s1 + $0x18] sm:$0xff] (!%p142_p9)  ;;  %v188_v2 = vld [vmem:[%s2932_s1] sm:$0xff] (!%p142_p9)  ;;  %v2228_v7 = vmov (!%p142_p9), 0.0   ;;  %s1687_s9 = sshll.u32 (!%p142_p9), %s2283_s16, 1  ;;  %v2229_v12 = vmov (!%p142_p9), 0  }
   0xe   : > { %145 = sbr.rel (%p142_p9) target bundleno = 976 (0x3d0), region = 32  ;;  %v1750_v3 = vpack.c.bf16 (!%p142_p9), %v191_v1, %v189_v0  ;;  %v190_v4 = vld [vmem:[%s2932_s1 + $0x10] sm:$0xff] (!%p142_p9)  ;;  %v193_v5 = vld [vmem:[%s2932_s1 + $0x28] sm:$0xff] (!%p142_p9)  ;;  %v195_v6 = vld [vmem:[%s2932_s1 + $0x38] sm:$0xff] (!%p142_p9)  ;;  %318 = vmatprep.mubr.f32.mxu0 (!%p142_p9), %v2228_v7  ;;  %390 = vmatprep.mubr.f32.mxu1 (!%p142_p9), %v2228_v7  ;;  %p166_p10 = scmp.lt.s32.totalorder (!%p142_p9), %s1687_s9, 7  ;;  %vm247_vm0 = vcmask (!%p142_p9), 1040384  }
   0xf   : > { %v2331_v8 = vpack.c.bf16 (!%p142_p9), %v190_v4, %v188_v2  ;;  %v2333_v9 = vpack.c.bf16 (!%p142_p9), %v195_v6, %v193_v5  ;;  %v192_v10 = vld [vmem:[%s2932_s1 + $0x20] sm:$0xff] (!%p142_p9)  ;;  %v194_v11 = vld [vmem:[%s2932_s1 + $0x30] sm:$0xff] (!%p142_p9)  ;;  %2080 = vset.pattern.permute.xlu0 (!%p142_p9), %v2229_v12  ;;  %2082 = vset.pattern.permute.xlu1 (!%p142_p9), %v2229_v12  ;;  %v197_v14 = vld [vmem:[%s2932_s1 + $0x48] sm:$0x1] (!%p142_p9)  ;;  %vm198_vm1 = vcmask (!%p142_p9), 269312   ;;  %v2230_v22 = vmov (!%p142_p9), 1  }
  0x10   : > { %1751 = vmatprep.subr.bf16.mxu0 (!%p142_p9), %v1750_v3  ;;  %2022 = vmatprep.subr.bf16.mxu1 (!%p142_p9), %v1750_v3  ;;  %v1756_v13 = vpack.c.bf16 (!%p142_p9), %v194_v11, %v192_v10  ;;  %v2359_v16 = vld [vmem:[%s2932_s1 + $0x40] sm:$0x1] (!%p142_p9)  ;;  %v173_v20 = vld [vmem:[%s2931_s0 + $0x8] sm:$0xff] (!%p142_p9)  ;;  %v174_v23 = vld [vmem:[%s2931_s0 + $0x10] sm:$0xff] (!%p142_p9)  ;;  %v2231_v25 = vmov (!%p142_p9), 2   ;;  %v2232_v26 = vmov (!%p142_p9), 3  }
  0x11   : > { %1753 = vmatpush1.bf16.msra.mxu0 (!%p142_p9), %v2331_v8  ;;  %2025 = vmatpush1.bf16.msra.mxu1 (!%p142_p9), %v2331_v8  ;;  %v172_v18 = vld [vmem:[%s2931_s0] sm:$0xff] (!%p142_p9)  ;;  %v185_v21 = vld [vmem:[%s2931_s0 + $0x68] sm:$0xff] (!%p142_p9)  ;;  %v186_v24 = vld [vmem:[%s2931_s0 + $0x70] sm:$0xff] (!%p142_p9)  ;;  %v2233_v30 = vmov (!%p142_p9), 4   ;;  %v2234_v32 = vmov (!%p142_p9), 5   ;;  %s1707_s27 = sshll.u32 (!%p142_p9), %s2283_s16, 4 }
  0x12   : > { %1755 = vmatprep.subr.bf16.mxu0 (!%p142_p9), %v2333_v9  ;;  %2023 = vmatprep.subr.bf16.mxu1 (!%p142_p9), %v2333_v9  ;;  %v184_v19 = vld [vmem:[%s2931_s0 + $0x60] sm:$0xff] (!%p142_p9)  ;;  %v175_v27 = vld [vmem:[%s2931_s0 + $0x18] sm:$0xff] (!%p142_p9)  ;;  %v177_v31 = vld [vmem:[%s2931_s0 + $0x28] sm:$0xff] (!%p142_p9)  ;;  %s416_s30 = scalar_lea.vmem (!%p142_p9), %s2931_s0, %s1707_s27  ;;  %v2235_v40 = vmov (!%p142_p9), 6   ;;  %v2236_v41 = vmov (!%p142_p9), 7   ;;  %s2238_s4 = smov (!%p142_p9), 127  }
  0x13   : > { %v187_v28 = vld [vmem:[%s2931_s0 + $0x78] sm:$0xff] (!%p142_p9)  ;;  %v176_v29 = vld [vmem:[%s2931_s0 + $0x20] sm:$0xff] (!%p142_p9)  ;;  %v178_v33 = vld [vmem:[%s2931_s0 + $0x30] sm:$0xff] (!%p142_p9)  ;;  %s162_s5 = sand.u32 (!%p142_p9), 1, %s2218_s13  }
  0x14   : > { %v179_v34 = vld [vmem:[%s2931_s0 + $0x38] sm:$0xff] (!%p142_p9)  ;;  %v180_v35 = vld [vmem:[%s2931_s0 + $0x40] sm:$0xff] (!%p142_p9)  ;;  %v181_v36 = vld [vmem:[%s2931_s0 + $0x48] sm:$0xff] (!%p142_p9)  ;;  %s1686_s6 = sshll.u32 (!%p142_p9), %s162_s5, 4  ;;  %s2890_s19 = scalar_lea.sflag (!%p142_p9), [#allocation3], %s162_s5 }
  0x15   : > { %s2942_s9 = smov (!%p166_p10, %s1687_s9), 7  ;;  %1757 = vmatpush1.bf16.msra.mxu0 %v1756_v13  ;;  %2026 = vmatpush1.bf16.msra.mxu1 %v1756_v13  ;;  %v182_v37 = vld [vmem:[%s2931_s0 + $0x50] sm:$0xff]  ;;  %v183_v38 = vld [vmem:[%s2931_s0 + $0x58] sm:$0xff]  ;;  %v417_v39 = vld [vmem:[%s416_s30] sm:$0xff]  ;;  %s164_s7 = scalar_lea.vmem [#allocation2], %s1686_s6 }
  0x16   : > { %s1688_s25 = sshll.u32 %s2942_s9, 3  ;;  %1689 = vmatprep.subr.msk.mxu0 %vm247_vm0, %v197_v14  ;;  %2024 = vmatprep.subr.msk.mxu1 %vm247_vm0, %v197_v14  ;;  %v418_v42 = vld [vmem:[%s416_s30 + $0x8] sm:$0xff]  ;;  %s1618_s8 = sshll.u32 %s164_s7, 4  ;;  %s2882_s8 = int_to_ptr.vmem [resolvable:$true] %s1618_s8 }
  0x17   : > { %s169_s28 = scalar_lea.vmem %s2933_s2, %s1688_s25  ;;  %s1749_s9 = sshll.u32 %s2283_s16, 8 }
  0x18   : > { %v2353_v15 = vld [vmem:[%s169_s28] sm:$0xff]  ;;  %v2362_v17 = vld [vmem:[%s169_s28 + $0x8] sm:$0xff]  ;;  %s2888_s17 = scalar_lea.hbm %s2934_s3, %s1749_s9  ;;  %s2164_s20 = scalar_lea.vmem %s2882_s8, 256 }
  0x19   : > { %507 = vperm.xlu0 %2080, %v2353_v15   ;;  %510 = vperm.xlu1 %2082, %v2362_v17   ;;  %p2165_p11 = scmp.ne.s32.totalorder %s2882_s8, %s2164_s20  ;;  %s2239_s16 = smov [#allocation2]  }
  0x1a   : > { %1690 = vmatpush1.msk.msra.mxu0 %vm247_vm0, %v2359_v16  ;;  %2027 = vmatpush1.msk.msra.mxu1 %vm247_vm0, %v2359_v16  ;;  %s2168_s24 = sshll.u32 %s2239_s16, 4  ;;  %s2169_s24 = int_to_ptr.vmem [resolvable:$false] %s2168_s24 }
  0x1b   : > { %1691 = vmatmul.mubr.msk.f32.vlgmr.msra.gmra.mrb[0].mxu0 %vm198_vm1, %v172_v18  ;;  %1703 = vmatmul.mubr.msk.f32.vlgmr.msra.gmra.mrb[0].mxu1 %vm198_vm1, %v184_v19  ;;  %p2166_p12 = pnand %p2165_p11, %p2300_p5  ;;  %s2170_s25 = scalar_lea.vmem %s2169_s24, 512 }
  0x1c   : > { %324 = vmatprep.mubr.f32.mxu0 %v2228_v7  ;;  %396 = vmatprep.mubr.f32.mxu1 %v2228_v7  ;;  %p2171_p0 = scmp.lt.s32.totalorder %s2882_s8, %s2169_s24  ;;  %p2172_p1 = scmp.lt.s32.totalorder %s2170_s25, %s2164_s20 }
  0x1d   : > { %2081 = vset.pattern.permute.xlu0 %v2230_v22  ;;  %2083 = vset.pattern.permute.xlu1 %v2230_v22  ;;  %p2167_p13 = pneg %p2166_p12 }
  0x1e   : > { %618 = vperm.xlu0 %2081, %v2353_v15   ;;  %621 = vperm.xlu1 %2083, %v2362_v17   ;;  %p2173_p2 = por %p2172_p1, %p2171_p0 }
  0x1f   : > { %1692 = vmatmul.mubr.msk.f32.gmra.mrb[2].mxu0 %vm198_vm1, %v173_v20  ;;  %1704 = vmatmul.mubr.msk.f32.gmra.mrb[2].mxu1 %vm198_vm1, %v185_v21 }
  0x20   : > { %330 = vmatprep.mubr.f32.mxu0 %v2228_v7  ;;  %402 = vmatprep.mubr.f32.mxu1 %v2228_v7  ;;  %p2174_p3 = pnand %p2173_p2, %p2167_p13 }
  0x21   : > { %1759 = vmatprep.subr.bf16.mxu1 %v1750_v3 }
  0x22   : > { %2084 = vset.pattern.permute.xlu1 %v2231_v25  ;;  %2085 = vset.pattern.permute.xlu0 %v2232_v26 }
  0x23   : > { %1693 = vmatmul.mubr.msk.f32.gmra.mrb[4].mxu0 %vm198_vm1, %v174_v23  ;;  %1705 = vmatmul.mubr.msk.f32.gmra.mrb[4].mxu1 %vm198_vm1, %v186_v24 }
  0x24   : > { %336 = vmatprep.mubr.f32.mxu0 %v2228_v7  ;;  %408 = vmatprep.mubr.f32.mxu1 %v2228_v7 }
  0x25   : > { %729 = vperm.xlu1 %2084, %v2353_v15   ;;  %840 = vperm.xlu0 %2085, %v2353_v15  }
  0x26   : > { %1761 = vmatpush1.bf16.msra.mxu1 %v2331_v8 }
  0x27   : > { %1694 = vmatmul.mubr.msk.f32.gmra.mrb[6].mxu0 %vm198_vm1, %v175_v27  ;;  %1706 = vmatmul.mubr.msk.f32.gmra.mrb[6].mxu1 %vm198_vm1, %v187_v28 }
  0x28   : > { %342 = vmatprep.mubr.f32.mxu0 %v2228_v7  ;;  %1763 = vmatprep.subr.bf16.mxu1 %v2333_v9 }
  0x29   : > { %732 = vperm.xlu1 %2084, %v2362_v17   ;;  %2087 = vset.pattern.permute.xlu0 %v2233_v30 }
  0x2a   : > { %951 = vperm.xlu0 %2087, %v2353_v15   ;;  %1765 = vmatpush1.bf16.msra.mxu1 %v1756_v13 }
  0x2b   : > { %1695 = vmatmul.mubr.msk.f32.gmra.mrb[8].mxu0 %vm198_vm1, %v176_v29  ;;  %1708 = vmatprep.subr.msk.mxu1 %vm247_vm0, %v197_v14  ;;  %v504_v29 = vlaneseq }
  0x2c   : > { %348 = vmatprep.mubr.f32.mxu0 %v2228_v7  ;;  %489 = vmatprep.mubr.f32.mxu1 %v2228_v7 }
  0x2d   : > { %2086 = vset.pattern.permute.xlu1 %v2232_v26 }
  0x2e   : > { %843 = vperm.xlu1 %2086, %v2362_v17   ;;  %2090 = vset.pattern.permute.xlu0 %v2234_v32 }
  0x2f   : > { %1696 = vmatmul.mubr.msk.f32.gmra.mrb[10].mxu0 %vm198_vm1, %v177_v31  ;;  %1065 = vperm.xlu0 %2090, %v2362_v17   ;;  %v2539_v31 = vand.u32 127, %v504_v29 }
  0x30   : > { %354 = vmatprep.mubr.f32.mxu0 %v2228_v7  ;;  %1709 = vmatpush1.msk.msra.mxu1 %vm247_vm0, %v2359_v16 }
  0x31   : > { %1710 = vmatmul.mubr.msk.f32.vlgmr.msra.gmra.mrb[8].mxu1 %vm198_vm1, %v417_v39 }
  0x32   : > { %2088 = vset.pattern.permute.xlu1 %v2234_v32  ;;  %495 = vmatprep.mubr.f32.mxu1 %v2228_v7 }
  0x33   : > { %1697 = vmatmul.mubr.msk.f32.gmra.mrb[12].mxu0 %vm198_vm1, %v178_v33  ;;  %1062 = vperm.xlu1 %2088, %v2353_v15  }
  0x34   : > { %360 = vmatprep.mubr.f32.mxu0 %v2228_v7  ;;  %2093 = vset.pattern.permute.xlu0 %v2235_v40 }
  0x35   : > { %1176 = vperm.xlu0 %2093, %v2362_v17   ;;  %1711 = vmatmul.mubr.msk.f32.gmra.mrb[10].mxu1 %vm198_vm1, %v418_v42 }
  0x36   : > { %582 = vmatprep.mubr.f32.mxu1 %v2228_v7 }
  0x37   : > { %1698 = vmatmul.mubr.msk.f32.gmra.mrb[14].mxu0 %vm198_vm1, %v179_v34  ;;  %2089 = vset.pattern.permute.xlu1 %v2233_v30  ;;  %v2237_v34 = vmov 1.0  }
  0x38   : > { %366 = vmatprep.mubr.f32.mxu0 %v2228_v7  ;;  %954 = vperm.xlu1 %2089, %v2362_v17  }
  0x39   : > { %2095 = vset.pattern.permute.xlu0 %v2229_v12 }
  0x3b   : > { %1699 = vmatmul.mubr.msk.f32.gmra.mrb[16].mxu0 %vm198_vm1, %v180_v35 }
  0x3c   : > { %372 = vmatprep.mubr.f32.mxu0 %v2228_v7  ;;  %2091 = vset.pattern.permute.xlu1 %v2235_v40 }
  0x3d   : > { %1173 = vperm.xlu1 %2091, %v2353_v15  }
  0x3f   : > { %1700 = vmatmul.mubr.msk.f32.gmra.mrb[18].mxu0 %vm198_vm1, %v181_v36 }
  0x40   : > { %378 = vmatprep.mubr.f32.mxu0 %v2228_v7 }
  0x41   : > { %2092 = vset.pattern.permute.xlu1 %v2236_v41 }
  0x42   : > { %1284 = vperm.xlu1 %2092, %v2353_v15  }
  0x43   : > { %1701 = vmatmul.mubr.msk.f32.gmra.mrb[20].mxu0 %vm198_vm1, %v182_v37 }
  0x44   : > { %384 = vmatprep.mubr.f32.mxu0 %v2228_v7 }
  0x46   : > { %1287 = vperm.xlu1 %2092, %v2362_v17  }
  0x47   : > { %1702 = vmatmul.mubr.msk.f32.gmra.mrb[22].mxu0 %vm198_vm1, %v183_v38 }
  0x48   : > { %693 = vmatprep.mubr.f32.mxu0 %v2228_v7 }
  0x4a   : > { %2094 = vset.pattern.permute.xlu1 %v2229_v12 }
  0x98   : > { %v508_v28 = vpop.permute.xlu0 %507  ;;  %v511_v30 = vpop.permute.xlu1 %510 }
  0x99   : > { %vm512_vm2 = vcmp.eq.s32.totalorder %v2539_v31, %v508_v28  ;;  %vm513_vm4 = vcmp.eq.s32.totalorder %v2539_v31, %v511_v30 }
  0x9d   : > { %v619_v32 = vpop.permute.xlu0 %618  ;;  %v622_v33 = vpop.permute.xlu1 %621 }
  0x9e   : > { %vm623_vm3 = vcmp.eq.s32.totalorder %v2539_v31, %v619_v32  ;;  %vm624_vm5 = vcmp.eq.s32.totalorder %v2539_v31, %v622_v33 }
  0xa4   : > { %v730_v35 = vpop.permute.xlu1 %729  ;;  %v841_v37 = vpop.permute.xlu0 %840 }
  0xa5   : > { %vm734_vm6 = vcmp.eq.s32.totalorder %v2539_v31, %v730_v35  ;;  %vm845_vm7 = vcmp.eq.s32.totalorder %v2539_v31, %v841_v37 }
  0xa8   : > { %v733_v36 = vpop.permute.xlu1 %732 }
  0xa9   : > { %vm735_vm9 = vcmp.eq.s32.totalorder %v2539_v31, %v733_v36  ;;  %v952_v42 = vpop.permute.xlu0 %951 }
  0xaa   : > { %vm956_vm11 = vcmp.eq.s32.totalorder %v2539_v31, %v952_v42 }
  0xad   : > { %v844_v38 = vpop.permute.xlu1 %843 }
  0xae   : > { %vm846_vm8 = vcmp.eq.s32.totalorder %v2539_v31, %v844_v38 }
  0xb2   : > { %v1063_v41 = vpop.permute.xlu1 %1062 }
  0xb3   : > { %vm1067_vm10 = vcmp.eq.s32.totalorder %v2539_v31, %v1063_v41 }
  0xee   : > { %v320_v43 = vpop.f32.mrb[0].mxu0  ;;  %v392_v44 = vpop.f32.mrb[0].mxu1 }
  0xef   : > { %v322_v45 = vpop.f32.mrb[1].mxu0  ;;  %v394_v46 = vpop.f32.mrb[1].mxu1 }
  0xf2   : > { %v326_v47 = vpop.f32.mrb[2].mxu0  ;;  %v398_v48 = vpop.f32.mrb[2].mxu1 }
  0xf3   : > { %v2479_v49 = vpack.c.bf16 %v326_v47, %v320_v43  ;;  %v328_v50 = vpop.f32.mrb[3].mxu0  ;;  %v2481_v51 = vpack.c.bf16 %v398_v48, %v392_v44  ;;  %v400_v52 = vpop.f32.mrb[3].mxu1 }
  0xf4   : > { %v2483_v53 = vpack.c.bf16 %v328_v50, %v322_v45  ;;  %v2485_v54 = vpack.c.bf16 %v400_v52, %v394_v46  ;;  %v955_v43 = vpop.permute.xlu1 %954  ;;  %v1066_v44 = vpop.permute.xlu0 %1065 }
  0xf5   : > { %vm957_vm12 = vcmp.eq.s32.totalorder %v2539_v31, %v955_v43  ;;  %vm1068_vm13 = vcmp.eq.s32.totalorder %v2539_v31, %v1066_v44 }
  0xf6   : > { %v332_v55 = vpop.f32.mrb[4].mxu0  ;;  %1767 = vmatprep.subr.bf16.mxu1 %v2483_v53  ;;  %1799 = vmatprep.subr.bf16.mxu0 %v2483_v53  ;;  %v404_v56 = vpop.f32.mrb[4].mxu1 }
  0xf7   : > { %v334_v57 = vpop.f32.mrb[5].mxu0  ;;  %1769 = vmatpush1.bf16.msra.mxu1 %v2479_v49  ;;  %1801 = vmatpush1.bf16.msra.mxu0 %v2479_v49  ;;  %v406_v58 = vpop.f32.mrb[5].mxu1 }
  0xf8   : > { %v1174_v47 = vpop.permute.xlu1 %1173  ;;  %v1177_v50 = vpop.permute.xlu0 %1176 }
  0xf9   : > { %vm1178_vm14 = vcmp.eq.s32.totalorder %v2539_v31, %v1174_v47  ;;  %vm1179_vm1 = vcmp.eq.s32.totalorder %v2539_v31, %v1177_v50 }
  0xfa   : > { %v338_v59 = vpop.f32.mrb[6].mxu0  ;;  %v410_v60 = vpop.f32.mrb[6].mxu1 }
  0xfb   : > { %v2491_v61 = vpack.c.bf16 %v338_v59, %v332_v55  ;;  %v340_v62 = vpop.f32.mrb[7].mxu0  ;;  %v2493_v63 = vpack.c.bf16 %v410_v60, %v404_v56  ;;  %v412_v0 = vpop.f32.mrb[7].mxu1 }
  0xfc   : > { %v2495_v1 = vpack.c.bf16 %v340_v62, %v334_v57  ;;  %v2497_v2 = vpack.c.bf16 %v412_v0, %v406_v58  ;;  %v1285_v48 = vpop.permute.xlu1 %1284 }
  0xfd   : > { %vm1289_vm15 = vcmp.eq.s32.totalorder %v2539_v31, %v1285_v48 }
  0xfe   : > { %v344_v3 = vpop.f32.mrb[8].mxu0  ;;  %1771 = vmatprep.subr.bf16.mxu1 %v2495_v1  ;;  %1803 = vmatprep.subr.bf16.mxu0 %v2495_v1 }
  0xff   : > { %v346_v4 = vpop.f32.mrb[9].mxu0  ;;  %1773 = vmatpush1.bf16.msra.mxu1 %v2491_v61  ;;  %1805 = vmatpush1.bf16.msra.mxu0 %v2491_v61 }
 0x102   : > { %v350_v5 = vpop.f32.mrb[10].mxu0 }
 0x103   : > { %v2503_v6 = vpack.c.bf16 %v350_v5, %v344_v3  ;;  %v352_v8 = vpop.f32.mrb[11].mxu0 }
 0x104   : > { %v2505_v9 = vpack.c.bf16 %v352_v8, %v346_v4  ;;  %v2595_v39 = vpop.f32.mrb[8].mxu1 }
 0x105   : > { %v2600_v40 = vpop.f32.mrb[9].mxu1 }
 0x106   : > { %v356_v10 = vpop.f32.mrb[12].mxu0  ;;  %1775 = vmatprep.subr.bf16.mxu1 %v2505_v9  ;;  %1807 = vmatprep.subr.bf16.mxu0 %v2505_v9 }
 0x107   : > { %v358_v11 = vpop.f32.mrb[13].mxu0  ;;  %1777 = vmatpush1.bf16.msra.mxu1 %v2503_v6  ;;  %1809 = vmatpush1.bf16.msra.mxu0 %v2503_v6 }
 0x108   : > { %v2667_v45 = vpop.f32.mrb[10].mxu1 }
 0x109   : > { %v2669_v46 = vpop.f32.mrb[11].mxu1 }
 0x10a   : > { %v362_v12 = vpop.f32.mrb[14].mxu0 }
 0x10b   : > { %v2511_v13 = vpack.c.bf16 %v362_v12, %v356_v10  ;;  %v364_v14 = vpop.f32.mrb[15].mxu0 }
 0x10c   : > { %v2513_v15 = vpack.c.bf16 %v364_v14, %v358_v11 }
 0x10e   : > { %v368_v16 = vpop.f32.mrb[16].mxu0  ;;  %1779 = vmatprep.subr.bf16.mxu1 %v2513_v15  ;;  %1811 = vmatprep.subr.bf16.mxu0 %v2513_v15 }
 0x10f   : > { %v370_v17 = vpop.f32.mrb[17].mxu0  ;;  %1781 = vmatpush1.bf16.msra.mxu1 %v2511_v13  ;;  %1813 = vmatpush1.bf16.msra.mxu0 %v2511_v13 }
 0x112   : > { %v374_v18 = vpop.f32.mrb[18].mxu0 }
 0x113   : > { %v2519_v19 = vpack.c.bf16 %v374_v18, %v368_v16  ;;  %v376_v20 = vpop.f32.mrb[19].mxu0 }
 0x114   : > { %v2521_v21 = vpack.c.bf16 %v376_v20, %v370_v17 }
 0x116   : > { %v380_v22 = vpop.f32.mrb[20].mxu0  ;;  %1783 = vmatprep.subr.bf16.mxu1 %v2521_v21  ;;  %1815 = vmatprep.subr.bf16.mxu0 %v2521_v21 }
 0x117   : > { %v382_v23 = vpop.f32.mrb[21].mxu0  ;;  %1785 = vmatpush1.bf16.msra.mxu1 %v2519_v19  ;;  %1817 = vmatpush1.bf16.msra.mxu0 %v2519_v19 }
 0x11a   : > { %v386_v24 = vpop.f32.mrb[22].mxu0 }
 0x11b   : > { %v2527_v25 = vpack.c.bf16 %v386_v24, %v380_v22  ;;  %v388_v26 = vpop.f32.mrb[23].mxu0 }
 0x11c   : > { %v2529_v27 = vpack.c.bf16 %v388_v26, %v382_v23 }
 0x11e   : > { %1787 = vmatprep.subr.bf16.mxu1 %v2529_v27  ;;  %1819 = vmatprep.subr.bf16.mxu0 %v2529_v27 }
 0x11f   : > { %1789 = vmatpush1.bf16.msra.mxu1 %v2527_v25  ;;  %1821 = vmatpush1.bf16.msra.mxu0 %v2527_v25 }
 0x120   : > { %1791 = vmatprep.subr.bf16.mxu1 %v2485_v54  ;;  %1823 = vmatprep.subr.bf16.mxu0 %v2485_v54 }
 0x123   : > { %1793 = vmatpush1.bf16.msra.mxu1 %v2481_v51  ;;  %1825 = vmatpush1.bf16.msra.mxu0 %v2481_v51 }
 0x124   : > { %1795 = vmatprep.subr.bf16.mxu1 %v2497_v2  ;;  %1827 = vmatprep.subr.bf16.mxu0 %v2497_v2 }
 0x127   : > { %1797 = vmatpush1.bf16.msra.mxu1 %v2493_v63  ;;  %1829 = vmatpush1.bf16.msra.mxu0 %v2493_v63 }
 0x128   : > { %1831 = vmatprep.subr.bf16.mxu1 %v2483_v53  ;;  %1863 = vmatprep.subr.bf16.mxu0 %v2483_v53 }
 0x12a   : > { %1714 = vmatmul.mubr.msk.f32.vlgmr.msra.gmra.mrb[12].mxu1 %vm512_vm2, %v2237_v34  ;;  %1718 = vmatmul.mubr.msk.f32.vlgmr.msra.gmra.mrb[24].mxu0 %vm623_vm3, %v2237_v34 }
 0x12b   : > { %1833 = vmatpush1.bf16.msra.mxu1 %v2479_v49  ;;  %1865 = vmatpush1.bf16.msra.mxu0 %v2479_v49 }
 0x12c   : > { %1835 = vmatprep.subr.bf16.mxu1 %v2495_v1  ;;  %1867 = vmatprep.subr.bf16.mxu0 %v2495_v1 }
 0x12d   : > { %588 = vmatprep.mubr.f32.mxu1 %v2228_v7  ;;  %699 = vmatprep.mubr.f32.mxu0 %v2228_v7 }
 0x12e   : > { %1715 = vmatmul.mubr.msk.f32.gmra.mrb[14].mxu1 %vm513_vm4, %v2237_v34  ;;  %1719 = vmatmul.mubr.msk.f32.gmra.mrb[26].mxu0 %vm624_vm5, %v2237_v34 }
 0x12f   : > { %1837 = vmatpush1.bf16.msra.mxu1 %v2491_v61  ;;  %1869 = vmatpush1.bf16.msra.mxu0 %v2491_v61 }
 0x130   : > { %1839 = vmatprep.subr.bf16.mxu1 %v2505_v9  ;;  %1871 = vmatprep.subr.bf16.mxu0 %v2505_v9 }
 0x131   : > { %804 = vmatprep.mubr.f32.mxu1 %v2228_v7  ;;  %915 = vmatprep.mubr.f32.mxu0 %v2228_v7 }
 0x133   : > { %1841 = vmatpush1.bf16.msra.mxu1 %v2503_v6  ;;  %1873 = vmatpush1.bf16.msra.mxu0 %v2503_v6 }
 0x134   : > { %1843 = vmatprep.subr.bf16.mxu1 %v2513_v15  ;;  %1875 = vmatprep.subr.bf16.mxu0 %v2513_v15 }
 0x137   : > { %1845 = vmatpush1.bf16.msra.mxu1 %v2511_v13  ;;  %1877 = vmatpush1.bf16.msra.mxu0 %v2511_v13 }
 0x138   : > { %1847 = vmatprep.subr.bf16.mxu1 %v2521_v21  ;;  %1879 = vmatprep.subr.bf16.mxu0 %v2521_v21 }
 0x13b   : > { %1849 = vmatpush1.bf16.msra.mxu1 %v2519_v19  ;;  %1881 = vmatpush1.bf16.msra.mxu0 %v2519_v19 }
 0x13c   : > { %1851 = vmatprep.subr.bf16.mxu1 %v2529_v27  ;;  %1883 = vmatprep.subr.bf16.mxu0 %v2529_v27 }
 0x13f   : > { %1853 = vmatpush1.bf16.msra.mxu1 %v2527_v25  ;;  %1885 = vmatpush1.bf16.msra.mxu0 %v2527_v25 }
 0x140   : > { %1855 = vmatprep.subr.bf16.mxu1 %v2485_v54  ;;  %1887 = vmatprep.subr.bf16.mxu0 %v2485_v54 }
 0x143   : > { %1857 = vmatpush1.bf16.msra.mxu1 %v2481_v51  ;;  %1889 = vmatpush1.bf16.msra.mxu0 %v2481_v51 }
 0x144   : > { %1859 = vmatprep.subr.bf16.mxu1 %v2497_v2  ;;  %1891 = vmatprep.subr.bf16.mxu0 %v2497_v2 }
 0x147   : > { %1861 = vmatpush1.bf16.msra.mxu1 %v2493_v63  ;;  %1893 = vmatpush1.bf16.msra.mxu0 %v2493_v63 }
 0x148   : > { %1895 = vmatprep.subr.bf16.mxu1 %v2483_v53  ;;  %1927 = vmatprep.subr.bf16.mxu0 %v2483_v53 }
 0x14a   : > { %1722 = vmatmul.mubr.msk.f32.vlgmr.msra.gmra.mrb[16].mxu1 %vm734_vm6, %v2237_v34  ;;  %1726 = vmatmul.mubr.msk.f32.vlgmr.msra.gmra.mrb[28].mxu0 %vm845_vm7, %v2237_v34 }
 0x14b   : > { %1897 = vmatpush1.bf16.msra.mxu1 %v2479_v49  ;;  %1929 = vmatpush1.bf16.msra.mxu0 %v2479_v49 }
 0x14c   : > { %1899 = vmatprep.subr.bf16.mxu1 %v2495_v1  ;;  %1931 = vmatprep.subr.bf16.mxu0 %v2495_v1 }
 0x14d   : > { %810 = vmatprep.mubr.f32.mxu1 %v2228_v7  ;;  %921 = vmatprep.mubr.f32.mxu0 %v2228_v7 }
 0x14e   : > { %1723 = vmatmul.mubr.msk.f32.gmra.mrb[18].mxu1 %vm735_vm9, %v2237_v34  ;;  %1727 = vmatmul.mubr.msk.f32.gmra.mrb[30].mxu0 %vm846_vm8, %v2237_v34 }
 0x14f   : > { %1901 = vmatpush1.bf16.msra.mxu1 %v2491_v61  ;;  %1933 = vmatpush1.bf16.msra.mxu0 %v2491_v61 }
 0x150   : > { %1903 = vmatprep.subr.bf16.mxu1 %v2505_v9  ;;  %1935 = vmatprep.subr.bf16.mxu0 %v2505_v9 }
 0x151   : > { %1026 = vmatprep.mubr.f32.mxu1 %v2228_v7  ;;  %1137 = vmatprep.mubr.f32.mxu0 %v2228_v7 }
 0x153   : > { %1905 = vmatpush1.bf16.msra.mxu1 %v2503_v6  ;;  %1937 = vmatpush1.bf16.msra.mxu0 %v2503_v6 }
 0x154   : > { %1907 = vmatprep.subr.bf16.mxu1 %v2513_v15  ;;  %1939 = vmatprep.subr.bf16.mxu0 %v2513_v15 }
 0x157   : > { %1909 = vmatpush1.bf16.msra.mxu1 %v2511_v13  ;;  %1941 = vmatpush1.bf16.msra.mxu0 %v2511_v13 }
 0x158   : > { %1911 = vmatprep.subr.bf16.mxu1 %v2521_v21  ;;  %1943 = vmatprep.subr.bf16.mxu0 %v2521_v21 }
 0x15b   : > { %1913 = vmatpush1.bf16.msra.mxu1 %v2519_v19  ;;  %1945 = vmatpush1.bf16.msra.mxu0 %v2519_v19 }
 0x15c   : > { %1915 = vmatprep.subr.bf16.mxu1 %v2529_v27  ;;  %1947 = vmatprep.subr.bf16.mxu0 %v2529_v27 }
 0x15f   : > { %1917 = vmatpush1.bf16.msra.mxu1 %v2527_v25  ;;  %1949 = vmatpush1.bf16.msra.mxu0 %v2527_v25 }
 0x160   : > { %1919 = vmatprep.subr.bf16.mxu1 %v2485_v54  ;;  %1951 = vmatprep.subr.bf16.mxu0 %v2485_v54 }
 0x163   : > { %1921 = vmatpush1.bf16.msra.mxu1 %v2481_v51  ;;  %1953 = vmatpush1.bf16.msra.mxu0 %v2481_v51 }
 0x164   : > { %1923 = vmatprep.subr.bf16.mxu1 %v2497_v2  ;;  %1955 = vmatprep.subr.bf16.mxu0 %v2497_v2 }
 0x167   : > { %1925 = vmatpush1.bf16.msra.mxu1 %v2493_v63  ;;  %1957 = vmatpush1.bf16.msra.mxu0 %v2493_v63 }
 0x168   : > { %1959 = vmatprep.subr.bf16.mxu1 %v2483_v53  ;;  %1991 = vmatprep.subr.bf16.mxu0 %v2483_v53 }
 0x16a   : > { %1730 = vmatmul.mubr.msk.f32.vlgmr.msra.gmra.mrb[20].mxu1 %vm956_vm11, %v2237_v34  ;;  %1734 = vmatmul.mubr.msk.f32.vlgmr.msra.gmra.mrb[32].mxu0 %vm1067_vm10, %v2237_v34 }
 0x16b   : > { %1961 = vmatpush1.bf16.msra.mxu1 %v2479_v49  ;;  %1993 = vmatpush1.bf16.msra.mxu0 %v2479_v49  ;;  %v1288_v49 = vpop.permute.xlu1 %1287 }
 0x16c   : > { %1963 = vmatprep.subr.bf16.mxu1 %v2495_v1  ;;  %1995 = vmatprep.subr.bf16.mxu0 %v2495_v1  ;;  %vm1290_vm0 = vcmp.eq.s32.totalorder %v2539_v31, %v1288_v49 }
 0x16d   : > { %1032 = vmatprep.mubr.f32.mxu1 %v2228_v7  ;;  %1143 = vmatprep.mubr.f32.mxu0 %v2228_v7 }
 0x16e   : > { %1731 = vmatmul.mubr.msk.f32.gmra.mrb[22].mxu1 %vm957_vm12, %v2237_v34  ;;  %1735 = vmatmul.mubr.msk.f32.gmra.mrb[34].mxu0 %vm1068_vm13, %v2237_v34 }
 0x16f   : > { %1965 = vmatpush1.bf16.msra.mxu1 %v2491_v61  ;;  %1997 = vmatpush1.bf16.msra.mxu0 %v2491_v61 }
 0x170   : > { %1967 = vmatprep.subr.bf16.mxu1 %v2505_v9  ;;  %1999 = vmatprep.subr.bf16.mxu0 %v2505_v9 }
 0x171   : > { %1248 = vmatprep.mubr.f32.mxu1 %v2228_v7  ;;  %1359 = vmatprep.mubr.f32.mxu0 %v2228_v7 }
 0x173   : > { %1969 = vmatpush1.bf16.msra.mxu1 %v2503_v6  ;;  %2001 = vmatpush1.bf16.msra.mxu0 %v2503_v6 }
 0x174   : > { %1971 = vmatprep.subr.bf16.mxu1 %v2513_v15  ;;  %2003 = vmatprep.subr.bf16.mxu0 %v2513_v15 }
 0x177   : > { %1973 = vmatpush1.bf16.msra.mxu1 %v2511_v13  ;;  %2005 = vmatpush1.bf16.msra.mxu0 %v2511_v13 }
 0x178   : > { %1975 = vmatprep.subr.bf16.mxu1 %v2521_v21  ;;  %2007 = vmatprep.subr.bf16.mxu0 %v2521_v21 }
 0x17b   : > { %1977 = vmatpush1.bf16.msra.mxu1 %v2519_v19  ;;  %2009 = vmatpush1.bf16.msra.mxu0 %v2519_v19 }
 0x17c   : > { %1979 = vmatprep.subr.bf16.mxu1 %v2529_v27  ;;  %2011 = vmatprep.subr.bf16.mxu0 %v2529_v27 }
 0x17f   : > { %1981 = vmatpush1.bf16.msra.mxu1 %v2527_v25  ;;  %2013 = vmatpush1.bf16.msra.mxu0 %v2527_v25 }
 0x180   : > { %1983 = vmatprep.subr.bf16.mxu1 %v2485_v54  ;;  %2015 = vmatprep.subr.bf16.mxu0 %v2485_v54 }
 0x183   : > { %1985 = vmatpush1.bf16.msra.mxu1 %v2481_v51  ;;  %2017 = vmatpush1.bf16.msra.mxu0 %v2481_v51 }
 0x184   : > { %1987 = vmatprep.subr.bf16.mxu1 %v2497_v2  ;;  %2019 = vmatprep.subr.bf16.mxu0 %v2497_v2 }
 0x187   : > { %1989 = vmatpush1.bf16.msra.mxu1 %v2493_v63  ;;  %2021 = vmatpush1.bf16.msra.mxu0 %v2493_v63 }
 0x18a   : > { %1738 = vmatmul.mubr.msk.f32.vlgmr.msra.gmra.mrb[24].mxu1 %vm1178_vm14, %v2237_v34  ;;  %1742 = vmatmul.mubr.msk.f32.vlgmr.msra.gmra.mrb[36].mxu0 %vm1289_vm15, %v2237_v34 }
 0x18b   : > { %1254 = vmatprep.mubr.f32.mxu1 %v2228_v7  ;;  %1365 = vmatprep.mubr.f32.mxu0 %v2228_v7 }
 0x18e   : > { %1739 = vmatmul.mubr.msk.f32.gmra.mrb[26].mxu1 %vm1179_vm1, %v2237_v34  ;;  %1743 = vmatmul.mubr.msk.f32.gmra.mrb[38].mxu0 %vm1290_vm0, %v2237_v34 }
 0x1fd   : > { %v2695_v51 = vpop.f32.mrb[12].mxu1  ;;  %v2697_v52 = vpop.f32.mrb[24].mxu0 }
 0x1fe   : > { %v2699_v53 = vpop.f32.mrb[13].mxu1  ;;  %v2701_v54 = vpop.f32.mrb[25].mxu0 }
 0x1ff   : > { %v595_v55 = vsub.f32 %v2699_v53, %v2600_v40  ;;  %v706_v56 = vsub.f32 %v2701_v54, %v2600_v40 }
 0x201   : > { %v597_v57 = vand.u32 2147483647, %v595_v55  ;;  %v2707_v7 = vpop.f32.mrb[14].mxu1  ;;  %v2709_v58 = vpop.f32.mrb[26].mxu0  ;;  %v708_v62 = vand.u32 2147483647, %v706_v56 }
 0x202   : > { %v2711_v59 = vpop.f32.mrb[15].mxu1  ;;  %v2713_v60 = vpop.f32.mrb[27].mxu0 }
 0x203   : > { %v599_v61 = vsub.f32 0.0, %v597_v57  ;;  %v596_v63 = vsub.f32 %v2711_v59, %v2669_v46  ;;  %v707_v0 = vsub.f32 %v2713_v60, %v2669_v46  ;;  %v710_v2 = vsub.f32 0.0, %v708_v62 }
 0x205   : > { %v598_v1 = vand.u32 2147483647, %v596_v63  ;;  %603 = vrot.lane.b32.xlu1 %v599_v61, %s2238_s4  ;;  %v709_v4 = vand.u32 2147483647, %v707_v0 }
 0x207   : > { %v600_v3 = vsub.f32 0.0, %v598_v1  ;;  %v711_v5 = vsub.f32 0.0, %v709_v4 }
 0x209   : > { %605 = vrot.lane.b32.xlu0 %v600_v3, %s2238_s4  ;;  %714 = vrot.lane.b32.xlu1 %v710_v2, %s2238_s4 }
 0x20d   : > { %716 = vrot.lane.b32.xlu0 %v711_v5, %s2238_s4 }
 0x21d   : > { %v2723_v6 = vpop.f32.mrb[16].mxu1  ;;  %v2725_v8 = vpop.f32.mrb[28].mxu0 }
 0x21e   : > { %v2727_v9 = vpop.f32.mrb[17].mxu1  ;;  %v2729_v10 = vpop.f32.mrb[29].mxu0 }
 0x21f   : > { %v817_v11 = vsub.f32 %v2727_v9, %v2600_v40  ;;  %v928_v12 = vsub.f32 %v2729_v10, %v2600_v40 }
 0x221   : > { %v819_v13 = vand.u32 2147483647, %v817_v11  ;;  %v2735_v14 = vpop.f32.mrb[18].mxu1  ;;  %v2737_v15 = vpop.f32.mrb[30].mxu0  ;;  %v930_v19 = vand.u32 2147483647, %v928_v12 }
 0x222   : > { %v2739_v16 = vpop.f32.mrb[19].mxu1  ;;  %v2741_v17 = vpop.f32.mrb[31].mxu0 }
 0x223   : > { %v821_v18 = vsub.f32 0.0, %v819_v13  ;;  %v818_v20 = vsub.f32 %v2739_v16, %v2669_v46  ;;  %v929_v21 = vsub.f32 %v2741_v17, %v2669_v46  ;;  %v932_v23 = vsub.f32 0.0, %v930_v19 }
 0x225   : > { %v820_v22 = vand.u32 2147483647, %v818_v20  ;;  %825 = vrot.lane.b32.xlu1 %v821_v18, %s2238_s4  ;;  %v931_v25 = vand.u32 2147483647, %v929_v21 }
 0x227   : > { %v822_v24 = vsub.f32 0.0, %v820_v22  ;;  %v933_v26 = vsub.f32 0.0, %v931_v25 }
 0x229   : > { %827 = vrot.lane.b32.xlu0 %v822_v24, %s2238_s4  ;;  %936 = vrot.lane.b32.xlu1 %v932_v23, %s2238_s4 }
 0x22d   : > { %938 = vrot.lane.b32.xlu0 %v933_v26, %s2238_s4 }
 0x23d   : > { %v2751_v27 = vpop.f32.mrb[20].mxu1  ;;  %v2753_v28 = vpop.f32.mrb[32].mxu0 }
 0x23e   : > { %v2755_v29 = vpop.f32.mrb[21].mxu1  ;;  %v2757_v30 = vpop.f32.mrb[33].mxu0 }
 0x23f   : > { %v1039_v31 = vsub.f32 %v2755_v29, %v2600_v40  ;;  %v1150_v32 = vsub.f32 %v2757_v30, %v2600_v40 }
 0x241   : > { %v1041_v33 = vand.u32 2147483647, %v1039_v31  ;;  %v2763_v34 = vpop.f32.mrb[22].mxu1  ;;  %v2765_v35 = vpop.f32.mrb[34].mxu0  ;;  %v1152_v41 = vand.u32 2147483647, %v1150_v32 }
 0x242   : > { %v2767_v36 = vpop.f32.mrb[23].mxu1  ;;  %v2769_v37 = vpop.f32.mrb[35].mxu0 }
 0x243   : > { %v1043_v38 = vsub.f32 0.0, %v1041_v33  ;;  %v1040_v42 = vsub.f32 %v2767_v36, %v2669_v46  ;;  %v1151_v43 = vsub.f32 %v2769_v37, %v2669_v46  ;;  %v1154_v47 = vsub.f32 0.0, %v1152_v41 }
 0x245   : > { %v1042_v44 = vand.u32 2147483647, %v1040_v42  ;;  %1047 = vrot.lane.b32.xlu1 %v1043_v38, %s2238_s4  ;;  %v1153_v49 = vand.u32 2147483647, %v1151_v43 }
 0x247   : > { %v1044_v48 = vsub.f32 0.0, %v1042_v44  ;;  %v1155_v50 = vsub.f32 0.0, %v1153_v49 }
 0x249   : > { %1158 = vrot.lane.b32.xlu1 %v1154_v47, %s2238_s4  ;;  %1049 = vrot.lane.b32.xlu0 %v1044_v48, %s2238_s4 }
 0x24d   : > { %1160 = vrot.lane.b32.xlu0 %v1155_v50, %s2238_s4 }
 0x25d   : > { %v2779_v55 = vpop.f32.mrb[24].mxu1  ;;  %v2781_v56 = vpop.f32.mrb[36].mxu0 }
 0x25e   : > { %v2783_v57 = vpop.f32.mrb[25].mxu1  ;;  %v2785_v61 = vpop.f32.mrb[37].mxu0 }
 0x25f   : > { %v1261_v62 = vsub.f32 %v2783_v57, %v2600_v40  ;;  %v1372_v63 = vsub.f32 %v2785_v61, %v2600_v40 }
 0x261   : > { %v1263_v0 = vand.u32 2147483647, %v1261_v62  ;;  %v2791_v1 = vpop.f32.mrb[26].mxu1  ;;  %v2793_v2 = vpop.f32.mrb[38].mxu0  ;;  %v1374_v11 = vand.u32 2147483647, %v1372_v63 }
 0x262   : > { %v2795_v3 = vpop.f32.mrb[27].mxu1  ;;  %v2797_v4 = vpop.f32.mrb[39].mxu0 }
 0x263   : > { %v1265_v5 = vsub.f32 0.0, %v1263_v0  ;;  %v1262_v12 = vsub.f32 %v2795_v3, %v2669_v46  ;;  %v1373_v13 = vsub.f32 %v2797_v4, %v2669_v46  ;;  %v1376_v40 = vsub.f32 0.0, %v1374_v11 }
 0x265   : > { %v1264_v18 = vand.u32 2147483647, %v1262_v12  ;;  %1269 = vrot.lane.b32.xlu1 %v1265_v5, %s2238_s4  ;;  %v1375_v20 = vand.u32 2147483647, %v1373_v13 }
 0x267   : > { %v1266_v19 = vsub.f32 0.0, %v1264_v18  ;;  %v1377_v21 = vsub.f32 0.0, %v1375_v20 }
 0x269   : > { %1380 = vrot.lane.b32.xlu1 %v1376_v40, %s2238_s4  ;;  %1271 = vrot.lane.b32.xlu0 %v1266_v19, %s2238_s4 }
 0x26d   : > { %1382 = vrot.lane.b32.xlu0 %v1377_v21, %s2238_s4 }
 0x277   : > { %v604_v22 = vpop.permute.xlu1 %603 }
 0x278   : > { %v609_v23 = vmul.f32 %v604_v22, %v2699_v53 }
 0x27a   : > { %v611_v24 = vmul.f32 0.002, %v609_v23 }
 0x27b   : > { %v715_v25 = vpop.permute.xlu1 %714  ;;  %v606_v26 = vpop.permute.xlu0 %605 }
 0x27c   : > { %v720_v46 = vmul.f32 %v715_v25, %v2701_v54  ;;  %v610_v31 = vmul.f32 %v606_v26, %v2711_v59  ;;  %v613_v32 = vmul.f32 1.442695, %v611_v24 }
 0x27e   : > { %v722_v33 = vmul.f32 0.002, %v720_v46  ;;  %v612_v38 = vmul.f32 0.002, %v610_v31  ;;  %2096 = vpow2.f32 %v613_v32 }
 0x27f   : > { %v717_v41 = vpop.permute.xlu0 %716 }
 0x280   : > { %v724_v42 = vmul.f32 1.442695, %v722_v33  ;;  %v721_v43 = vmul.f32 %v717_v41, %v2713_v60  ;;  %v615_v44 = vmul.f32 1.442695, %v612_v38 }
 0x282   : > { %2098 = vpow2.f32 %v724_v42  ;;  %v723_v47 = vmul.f32 0.002, %v721_v43 }
 0x283   : > { %2100 = vpow2.f32 %v615_v44 }
 0x284   : > { %v726_v48 = vmul.f32 1.442695, %v723_v47 }
 0x286   : > { %2102 = vpow2.f32 %v726_v48 }
 0x288   : > { %v2811_v53 = vpop.eup %2096 }
 0x28c   : > { %v2813_v49 = vpop.eup %2098 }
 0x28d   : > { %v1394_v54 = vmax.f32 %v2811_v53, %v2813_v49  ;;  %v2817_v59 = vpop.eup %2100 }
 0x290   : > { %v2819_v50 = vpop.eup %2102 }
 0x291   : > { %v1395_v60 = vmax.f32 %v2817_v59, %v2819_v50 }
 0x297   : > { %v826_v62 = vpop.permute.xlu1 %825 }
 0x298   : > { %v831_v63 = vmul.f32 %v826_v62, %v2727_v9 }
 0x29a   : > { %v833_v0 = vmul.f32 0.002, %v831_v63 }
 0x29b   : > { %v937_v5 = vpop.permute.xlu1 %936  ;;  %v828_v11 = vpop.permute.xlu0 %827 }
 0x29c   : > { %v835_v12 = vmul.f32 1.442695, %v833_v0  ;;  %v942_v13 = vmul.f32 %v937_v5, %v2729_v10  ;;  %v832_v18 = vmul.f32 %v828_v11, %v2739_v16 }
 0x29e   : > { %2104 = vpow2.f32 %v835_v12  ;;  %v944_v40 = vmul.f32 0.002, %v942_v13  ;;  %v834_v19 = vmul.f32 0.002, %v832_v18 }
 0x29f   : > { %v939_v20 = vpop.permute.xlu0 %938 }
 0x2a0   : > { %v946_v21 = vmul.f32 1.442695, %v944_v40  ;;  %v837_v22 = vmul.f32 1.442695, %v834_v19  ;;  %v943_v23 = vmul.f32 %v939_v20, %v2741_v17 }
 0x2a2   : > { %2106 = vpow2.f32 %v946_v21  ;;  %v945_v24 = vmul.f32 0.002, %v943_v23 }
 0x2a3   : > { %2108 = vpow2.f32 %v837_v22 }
 0x2a4   : > { %v948_v9 = vmul.f32 1.442695, %v945_v24 }
 0x2a6   : > { %2110 = vpow2.f32 %v948_v9 }
 0x2a8   : > { %v2827_v25 = vpop.eup %2104 }
 0x2a9   : > { %v1396_v26 = vmax.f32 %v1394_v54, %v2827_v25 }
 0x2ac   : > { %v2830_v10 = vpop.eup %2106 }
 0x2ad   : > { %v2832_v16 = vpop.eup %2108  ;;  %v1398_v46 = vmax.f32 %v1396_v26, %v2830_v10 }
 0x2ae   : > { %v1397_v31 = vmax.f32 %v1395_v60, %v2832_v16 }
 0x2b0   : > { %v2836_v32 = vpop.eup %2110 }
 0x2b1   : > { %v1399_v17 = vmax.f32 %v1397_v31, %v2836_v32 }
 0x2b7   : > { %v1048_v33 = vpop.permute.xlu1 %1047 }
 0x2b8   : > { %v1053_v38 = vmul.f32 %v1048_v33, %v2755_v29 }
 0x2ba   : > { %v1055_v41 = vmul.f32 0.002, %v1053_v38 }
 0x2bb   : > { %v1159_v42 = vpop.permute.xlu1 %1158  ;;  %v1050_v43 = vpop.permute.xlu0 %1049 }
 0x2bc   : > { %v1057_v44 = vmul.f32 1.442695, %v1055_v41  ;;  %v1164_v47 = vmul.f32 %v1159_v42, %v2757_v30  ;;  %v1054_v48 = vmul.f32 %v1050_v43, %v2767_v36 }
 0x2be   : > { %2112 = vpow2.f32 %v1057_v44  ;;  %v1166_v54 = vmul.f32 0.002, %v1164_v47  ;;  %v1056_v62 = vmul.f32 0.002, %v1054_v48 }
 0x2bf   : > { %v1161_v63 = vpop.permute.xlu0 %1160 }
 0x2c0   : > { %v1168_v60 = vmul.f32 1.442695, %v1166_v54  ;;  %v1059_v0 = vmul.f32 1.442695, %v1056_v62  ;;  %v1165_v5 = vmul.f32 %v1161_v63, %v2769_v37 }
 0x2c2   : > { %2114 = vpow2.f32 %v1168_v60  ;;  %v1167_v11 = vmul.f32 0.002, %v1165_v5 }
 0x2c3   : > { %2116 = vpow2.f32 %v1059_v0 }
 0x2c4   : > { %v1170_v29 = vmul.f32 1.442695, %v1167_v11 }
 0x2c6   : > { %2118 = vpow2.f32 %v1170_v29 }
 0x2c8   : > { %v2113_v12 = vpop.eup %2112 }
 0x2c9   : > { %v1400_v13 = vmax.f32 %v1398_v46, %v2113_v12 }
 0x2cc   : > { %v2115_v18 = vpop.eup %2114 }
 0x2cd   : > { %v2843_v40 = vpop.eup %2116  ;;  %v1402_v30 = vmax.f32 %v1400_v13, %v2115_v18 }
 0x2ce   : > { %v1401_v36 = vmax.f32 %v1399_v17, %v2843_v40 }
 0x2d0   : > { %v2846_v19 = vpop.eup %2118 }
 0x2d1   : > { %v1403_v20 = vmax.f32 %v1401_v36, %v2846_v19 }
 0x2d7   : > { %v1270_v21 = vpop.permute.xlu1 %1269 }
 0x2d8   : > { %v1275_v37 = vmul.f32 %v1270_v21, %v2783_v57 }
 0x2da   : > { %v1277_v22 = vmul.f32 0.002, %v1275_v37 }
 0x2db   : > { %v1381_v23 = vpop.permute.xlu1 %1380  ;;  %v1272_v24 = vpop.permute.xlu0 %1271 }
 0x2dc   : > { %v1279_v9 = vmul.f32 1.442695, %v1277_v22  ;;  %v1386_v26 = vmul.f32 %v1381_v23, %v2785_v61  ;;  %v1276_v46 = vmul.f32 %v1272_v24, %v2795_v3 }
 0x2de   : > { %2120 = vpow2.f32 %v1279_v9  ;;  %v1388_v31 = vmul.f32 0.002, %v1386_v26  ;;  %v1278_v33 = vmul.f32 0.002, %v1276_v46 }
 0x2df   : > { %v1383_v38 = vpop.permute.xlu0 %1382 }
 0x2e0   : > { %v1390_v17 = vmul.f32 1.442695, %v1388_v31  ;;  %v1281_v41 = vmul.f32 1.442695, %v1278_v33  ;;  %v1387_v42 = vmul.f32 %v1383_v38, %v2797_v4 }
 0x2e2   : > { %2122 = vpow2.f32 %v1390_v17  ;;  %v1389_v43 = vmul.f32 0.002, %v1387_v42 }
 0x2e3   : > { %2124 = vpow2.f32 %v1281_v41 }
 0x2e4   : > { %v1392_v57 = vmul.f32 1.442695, %v1389_v43 }
 0x2e6   : > { %2126 = vpow2.f32 %v1392_v57 }
 0x2e8   : > { %v2121_v44 = vpop.eup %2120 }
 0x2e9   : > { %v1404_v47 = vmax.f32 %v1402_v30, %v2121_v44 }
 0x2ec   : > { %v2123_v48 = vpop.eup %2122 }
 0x2ed   : > { %v2125_v54 = vpop.eup %2124  ;;  %v1406_v61 = vmax.f32 %v1404_v47, %v2123_v48 }
 0x2ee   : > { %v1405_v62 = vmax.f32 %v1403_v20, %v2125_v54 }
 0x2ef   : > { %v1438_v3 = vsub.f32 %v2115_v18, %v1406_v61  ;;  %v1444_v63 = vsub.f32 %v2121_v44, %v1406_v61  ;;  %v1450_v60 = vsub.f32 %v2123_v48, %v1406_v61  ;;  %v1408_v0 = vsub.f32 %v2811_v53, %v1406_v61 }
 0x2f0   : > { %v2127_v5 = vpop.eup %2126  ;;  %v1414_v11 = vsub.f32 %v2813_v49, %v1406_v61  ;;  %v1420_v4 = vsub.f32 %v2827_v25, %v1406_v61  ;;  %v1426_v29 = vsub.f32 %v2830_v10, %v1406_v61  ;;  %v1432_v13 = vsub.f32 %v2113_v12, %v1406_v61 }
 0x2f1   : > { %v1407_v36 = vmax.f32 %v1405_v62, %v2127_v5  ;;  %v1410_v21 = vmul.f32 1.442695, %v1408_v0  ;;  %v1440_v26 = vmul.f32 1.442695, %v1438_v3  ;;  %v1446_v46 = vmul.f32 1.442695, %v1444_v63 }
 0x2f2   : > { %v1416_v30 = vmul.f32 1.442695, %v1414_v11  ;;  %v1422_v23 = vmul.f32 1.442695, %v1420_v4  ;;  %v1428_v10 = vmul.f32 1.442695, %v1426_v29 }
 0x2f3   : > { %v1439_v37 = vsub.f32 %v2846_v19, %v1407_v36  ;;  %v1445_v22 = vsub.f32 %v2125_v54, %v1407_v36  ;;  %v1451_v20 = vsub.f32 %v2127_v5, %v1407_v36  ;;  %v1409_v18 = vsub.f32 %v2817_v59, %v1407_v36 }
 0x2f4   : > { %2128 = vpow2.f32 %v1410_v21  ;;  %v1415_v53 = vsub.f32 %v2819_v50, %v1407_v36  ;;  %v1421_v49 = vsub.f32 %v2832_v16, %v1407_v36  ;;  %v1427_v25 = vsub.f32 %v2836_v32, %v1407_v36 }
 0x2f5   : > { %2130 = vpow2.f32 %v1416_v30  ;;  %v1433_v12 = vsub.f32 %v2843_v40, %v1407_v36  ;;  %v1434_v24 = vmul.f32 1.442695, %v1432_v13  ;;  %v1412_v9 = vmul.f32 1.442695, %v1409_v18 }
 0x2f6   : > { %2132 = vpow2.f32 %v1422_v23  ;;  %v1418_v19 = vmul.f32 1.442695, %v1415_v53  ;;  %v1424_v59 = vmul.f32 1.442695, %v1421_v49  ;;  %v1430_v50 = vmul.f32 1.442695, %v1427_v25 }
 0x2f7   : > { %2134 = vpow2.f32 %v1428_v10  ;;  %v1452_v33 = vmul.f32 1.442695, %v1450_v60  ;;  %v1436_v32 = vmul.f32 1.442695, %v1433_v12  ;;  %v1442_v38 = vmul.f32 1.442695, %v1439_v37 }
 0x2f8   : > { %2136 = vpow2.f32 %v1434_v24  ;;  %v1448_v41 = vmul.f32 1.442695, %v1445_v22  ;;  %v1454_v44 = vmul.f32 1.442695, %v1451_v20 }
 0x2f9   : > { %2138 = vpow2.f32 %v1412_v9 }
 0x2fa   : > { %2140 = vpow2.f32 %v1418_v19 }
 0x2fb   : > { %2142 = vpow2.f32 %v1440_v26 }
 0x2fc   : > { %2144 = vpow2.f32 %v1424_v59 }
 0x2fd   : > { %2146 = vpow2.f32 %v1446_v46 }
 0x2fe   : > { %v2129_v31 = vpop.eup %2128  ;;  %2148 = vpow2.f32 %v1430_v50 }
 0x2ff   : > { %v2131_v16 = vpop.eup %2130  ;;  %2150 = vpow2.f32 %v1452_v33 }
 0x300   : > { %v1456_v40 = vadd.f32 %v2131_v16, %v2129_v31  ;;  %v2133_v17 = vpop.eup %2132  ;;  %2152 = vpow2.f32 %v1436_v32 }
 0x301   : > { %v2135_v43 = vpop.eup %2134  ;;  %2154 = vpow2.f32 %v1442_v38 }
 0x302   : > { %v1458_v42 = vadd.f32 %v2133_v17, %v1456_v40  ;;  %v2137_v57 = vpop.eup %2136  ;;  %2156 = vpow2.f32 %v1448_v41 }
 0x303   : > { %v2139_v48 = vpop.eup %2138  ;;  %2158 = vpow2.f32 %v1454_v44 }
 0x304   : > { %v1460_v47 = vadd.f32 %v2135_v43, %v1458_v42  ;;  %v2141_v54 = vpop.eup %2140 }
 0x305   : > { %v2143_v62 = vpop.eup %2142  ;;  %v1457_v3 = vadd.f32 %v2141_v54, %v2139_v48 }
 0x306   : > { %v1462_v61 = vadd.f32 %v2137_v57, %v1460_v47  ;;  %v2145_v63 = vpop.eup %2144 }
 0x307   : > { %v2147_v0 = vpop.eup %2146  ;;  %v1459_v5 = vadd.f32 %v2145_v63, %v1457_v3 }
 0x308   : > { %v1464_v60 = vadd.f32 %v2143_v62, %v1462_v61  ;;  %v2149_v11 = vpop.eup %2148 }
 0x309   : > { %v2151_v29 = vpop.eup %2150  ;;  %v1461_v13 = vadd.f32 %v2149_v11, %v1459_v5 }
 0x30a   : > { %v1466_v4 = vadd.f32 %v2147_v0, %v1464_v60  ;;  %v2153_v36 = vpop.eup %2152 }
 0x30b   : > { %v1463_v30 = vadd.f32 %v2153_v36, %v1461_v13  ;;  %v2155_v37 = vpop.eup %2154 }
 0x30c   : > { %v1468_v21 = vadd.f32 %v2151_v29, %v1466_v4  ;;  %v2157_v20 = vpop.eup %2156 }
 0x30d   : > { %v1465_v22 = vadd.f32 %v2155_v37, %v1463_v30  ;;  %v2159_v23 = vpop.eup %2158 }
 0x30e   : > { %2160 = vrcp.f32 %v1468_v21 }
 0x30f   : > { %v1467_v18 = vadd.f32 %v2157_v20, %v1465_v22 }
 0x311   : > { %v1469_v53 = vadd.f32 %v2159_v23, %v1467_v18 }
 0x313   : > { %2162 = vrcp.f32 %v1469_v53 }
 0x318   : > { %v2161_v49 = vpop.eup %2160 }
 0x319   : > { %v1474_v25 = vmul.f32 %v2161_v49, %v2129_v31  ;;  %v1504_v10 = vmul.f32 %v2161_v49, %v2133_v17  ;;  %v1488_v12 = vmul.f32 %v2161_v49, %v2131_v16  ;;  %v1520_v24 = vmul.f32 %v2161_v49, %v2135_v43 }
 0x31a   : > { %v1536_v9 = vmul.f32 %v2161_v49, %v2137_v57  ;;  %v1552_v19 = vmul.f32 %v2161_v49, %v2143_v62  ;;  %v1568_v26 = vmul.f32 %v2161_v49, %v2147_v0  ;;  %v1584_v59 = vmul.f32 %v2161_v49, %v2151_v29 }
 0x31b   : > { %1478 = vperm.xlu1 %2094, %v1474_v25   ;;  %1508 = vperm.xlu0 %2095, %v1504_v10  }
 0x31d   : > { %v2163_v46 = vpop.eup %2162 }
 0x31e   : > { %v1489_v50 = vmul.f32 %v2163_v46, %v2141_v54  ;;  %v1505_v33 = vmul.f32 %v2163_v46, %v2145_v63  ;;  %v1475_v32 = vmul.f32 %v2163_v46, %v2139_v48  ;;  %v1521_v40 = vmul.f32 %v2163_v46, %v2149_v11 }
 0x31f   : > { %1492 = vperm.xlu1 %2094, %v1488_v12   ;;  %1524 = vperm.xlu0 %2095, %v1520_v24   ;;  %v1537_v38 = vmul.f32 %v2163_v46, %v2153_v36  ;;  %v1553_v41 = vmul.f32 %v2163_v46, %v2155_v37  ;;  %v1569_v42 = vmul.f32 %v2163_v46, %v2157_v20 }
 0x320   : > { %v1585_v31 = vmul.f32 %v2163_v46, %v2159_v23 }
 0x323   : > { %1540 = vperm.xlu0 %2095, %v1536_v9   ;;  %1497 = vperm.xlu1 %2094, %v1489_v50  }
 0x327   : > { %1513 = vperm.xlu1 %2094, %v1505_v33   ;;  %1483 = vperm.xlu0 %2095, %v1475_v32  }
 0x32b   : > { %1529 = vperm.xlu1 %2094, %v1521_v40   ;;  %1556 = vperm.xlu0 %2095, %v1552_v19  }
 0x32f   : > { %1545 = vperm.xlu1 %2094, %v1537_v38   ;;  %1572 = vperm.xlu0 %2095, %v1568_v26  }
 0x333   : > { %1561 = vperm.xlu1 %2094, %v1553_v41   ;;  %1588 = vperm.xlu0 %2095, %v1584_v59  }
 0x337   : > { %1577 = vperm.xlu1 %2094, %v1569_v42  }
 0x33b   : > { %1593 = vperm.xlu1 %2094, %v1585_v31  }
 0x39a   : > { %v1479_v16 = vpop.permute.xlu1 %1478  ;;  %v1509_v17 = vpop.permute.xlu0 %1508 }
 0x39b   : > { %v1486_v44 = vmul.f32 %v1479_v16, %v2695_v51  ;;  %v1516_v48 = vmul.f32 %v1509_v17, %v2723_v6 }
 0x39e   : > { %v1493_v43 = vpop.permute.xlu1 %1492  ;;  %v1525_v57 = vpop.permute.xlu0 %1524 }
 0x39f   : > { %v1500_v47 = vmul.f32 %v1493_v43, %v2697_v52  ;;  %v1532_v63 = vmul.f32 %v1525_v57, %v2725_v8 }
 0x3a1   : > { %v1502_v54 = vadd.f32 %v1500_v47, %v1486_v44 }
 0x3a2   : > { %v1498_v61 = vpop.permute.xlu1 %1497  ;;  %v1541_v62 = vpop.permute.xlu0 %1540 }
 0x3a3   : > { %v1518_v3 = vadd.f32 %v1516_v48, %v1502_v54  ;;  %v1548_v0 = vmul.f32 %v1541_v62, %v2751_v27  ;;  %v1501_v4 = vmul.f32 %v1498_v61, %v2709_v58 }
 0x3a5   : > { %v1534_v60 = vadd.f32 %v1532_v63, %v1518_v3 }
 0x3a6   : > { %v1514_v5 = vpop.permute.xlu1 %1513  ;;  %v1484_v11 = vpop.permute.xlu0 %1483 }
 0x3a7   : > { %v1550_v29 = vadd.f32 %v1548_v0, %v1534_v60  ;;  %v1487_v51 = vmul.f32 %v1484_v11, %v2707_v7  ;;  %v1517_v52 = vmul.f32 %v1514_v5, %v2735_v14 }
 0x3a9   : > { %v1503_v6 = vadd.f32 %v1501_v4, %v1487_v51 }
 0x3aa   : > { %v1530_v13 = vpop.permute.xlu1 %1529  ;;  %v1557_v36 = vpop.permute.xlu0 %1556 }
 0x3ab   : > { %v1519_v21 = vadd.f32 %v1517_v52, %v1503_v6  ;;  %v1533_v30 = vmul.f32 %v1530_v13, %v2737_v15  ;;  %v1564_v8 = vmul.f32 %v1557_v36, %v2753_v28 }
 0x3ad   : > { %v1535_v37 = vadd.f32 %v1533_v30, %v1519_v21  ;;  %v1566_v27 = vadd.f32 %v1564_v8, %v1550_v29 }
 0x3ae   : > { %v1546_v22 = vpop.permute.xlu1 %1545  ;;  %v1573_v20 = vpop.permute.xlu0 %1572 }
 0x3af   : > { %v1549_v58 = vmul.f32 %v1546_v22, %v2763_v34  ;;  %v1580_v18 = vmul.f32 %v1573_v20, %v2779_v55 }
 0x3b1   : > { %v1551_v7 = vadd.f32 %v1549_v58, %v1535_v37  ;;  %v1582_v23 = vadd.f32 %v1580_v18, %v1566_v27 }
 0x3b2   : > { %v1562_v14 = vpop.permute.xlu1 %1561  ;;  %v1589_v53 = vpop.permute.xlu0 %1588 }
 0x3b3   : > { %v1565_v49 = vmul.f32 %v1562_v14, %v2765_v35  ;;  %v1596_v15 = vmul.f32 %v1589_v53, %v2781_v56 }
 0x3b5   : > { %v1567_v28 = vadd.f32 %v1565_v49, %v1551_v7  ;;  %v1598_v25 = vadd.f32 %v1596_v15, %v1582_v23 }
 0x3b6   : > { %v1578_v10 = vpop.permute.xlu1 %1577 }
 0x3b7   : > { %v1600_v12 = vadd.f32 %v1598_v25, %v2595_v39  ;;  %v1581_v34 = vmul.f32 %v1578_v10, %v2791_v1 }
 0x3b9   : > { %1602 = vst [vmem:[%s164_s7] sm:$0xff] %v1600_v12  ;;  %v1583_v55 = vadd.f32 %v1581_v34, %v1567_v28 }
 0x3ba   : > { %v1594_v24 = vpop.permute.xlu1 %1593 }
 0x3bb   : > { %v1597_v9 = vmul.f32 %v1594_v24, %v2793_v2 }
 0x3bd   : > { %v1599_v35 = vadd.f32 %v1597_v9, %v1583_v55 }
 0x3bf   : > { %v1601_v56 = vadd.f32 %v1599_v35, %v2667_v45 }
 0x3c1   : > { %1603 = vst [vmem:[%s164_s7 + $0x8] sm:$0xff] %v1601_v56 }
 0x3c2   : > { %2177 = shalt.err (!%p2174_p3)
}
 0x3c3   : > { %s2178_s26 = scalar_lea.hbm %s2888_s17, 256  ;;  %s2182_s29 = scalar_lea.hbm %s2934_s3, 1024 }
 0x3c4   : > { %p2179_p4 = scmp.ne.s32.totalorder %s2888_s17, %s2178_s26  ;;  %p2183_p9 = scmp.lt.u32.totalorder %s2888_s17, %s2934_s3 }
 0x3c5   : > { %p2184_p10 = scmp.lt.u32.totalorder %s2182_s29, %s2178_s26  ;;  %p2186_p12 = scmp.lt.u32.totalorder %s2178_s26, %s2888_s17 }
 0x3c6   : > { %p2180_p7 = pnand %p2179_p4, %p2300_p5 }
 0x3c7   : > { %p2185_p11 = por %p2184_p10, %p2183_p9 }
 0x3c8   : > { %p2181_p8 = pneg %p2180_p7 }
 0x3c9   : > { %p2187_p13 = por %p2186_p12, %p2185_p11 }
 0x3cb   : > { %p2188_p0 = pnand %p2187_p13, %p2181_p8 }
 0x3cd   : > { %2191 = shalt.err (!%p2188_p0)
}
 0x3ce   : > { %s2240_s5 = smov 128   ;;  %s2241_s6 = smov 8  }
 0x3cf   : > { %2028 = dma.vmem_to_hbm [thread:$0]  (%p2300_p5), %s2882_s8, 256, %s2888_s17, %s2890_s19, %s2240_s5, %s2240_s5, %s2241_s6  }
 0x3d0 PF: > { %p2034_p1 = scmp.ge.s32.totalorder %s2226_s15, 2  ;;  %s1633_s7 = sand.u32 1, %s2214_s12  }
 0x3d1   : > { %s1634_s9 = scalar_lea.sflag [#allocation3], %s1633_s7 }
 0x3d2   : > { %p2031_p2 = pnand %p2034_p1, %p2304_p6 }
 0x3d4   : > { %2209 = dma.done.wait (!%p2031_p2), %s1634_s9, 256  }
 0x3d5   : > { %2211 = vsyncadd (!%p2031_p2), %s1634_s9, 4294967040  ;;  %p13_p3 = scmp.ge.s32.totalorder %s2287_s18, 6   ;;  %s2937_s12 = smov %s2218_s13 }
 0x3d6   : > { %s2938_s13 = smov %s2222_s14  ;;  %s2939_s14 = smov %s2298_s21 }
 0x3d7   : > { %s2940_s15 = smov %s2287_s18  ;;  %15 = sbr.rel (!%p13_p3) target bundleno = 3 (0x3), region = 68 }
 0x3de   :  { %1639 = vsyncpa [#allocation3], 1 }
 0x3df   :  { %1641 = vsyncpa [#allocation3 + $0x1], 1 }

</bundles_post_ra>
